<compile_context>
chip_gen: v7x
topology: tpu7x:2x2x1
jax: 0.10.0
libtpu: 0.0.40
codegen_flags: <defaults>
</compile_context>

<pallas_src>
import functools
import math

import jax
import jax.numpy as jnp
from jax import lax
from jax.experimental import pallas as pl
from jax.experimental.pallas import tpu as pltpu


def _round_up(x, m):
    return (x + m - 1) // m * m


# ----------------------------- Pallas kernels ------------------------------

def _flatten_rows(v, m):
    """(Ho, Wo, C) -> (Ho*Wo, C).  Upcast to f32 first whenever the dtype's
    sublane packing (8 rows for f32, 16 for bf16) does not divide Wo, so the
    collapse stays a trivially legal relayout."""
    pack = 8 * (4 // v.dtype.itemsize)
    if v.shape[1] % pack != 0:
        v = v.astype(jnp.float32)
    return v.reshape(m, v.shape[-1])


def _accum_taps(x_ref, w_ref, taps, Ho, Wo):
    """sum_t  x_slab_t @ W_t  with f32 accumulation.

    x_ref : (1, Hs, Ws, Cph) haloed (phase-concatenated) input block
    w_ref : (9, Cin, Cout)   per-tap, BN-folded weights (VMEM resident)
    taps  : static list of (row_off, col_off, chan_off) per 3x3 tap
    """
    cin = w_ref.shape[1]
    acc = None
    for t, (r0, c0, k0) in enumerate(taps):
        slab = x_ref[0, r0:r0 + Ho, c0:c0 + Wo, k0:k0 + cin]
        slab = _flatten_rows(slab, Ho * Wo)
        d = jnp.dot(slab, w_ref[t], preferred_element_type=jnp.float32)
        acc = d if acc is None else acc + d
    return acc


def _conv_bn_kernel(x_ref, w_ref, b_ref, o_ref, *, taps, Ho, Wo, relu):
    """3x3 conv (BN folded into weights/bias) [+ ReLU]."""
    acc = _accum_taps(x_ref, w_ref, taps, Ho, Wo) + b_ref[...]
    if relu:
        acc = jnp.maximum(acc, 0.0)
    cout = o_ref.shape[-1]
    o_ref[0] = acc.reshape(Ho, Wo, cout).astype(o_ref.dtype)


def _conv_bn_res_kernel(x_ref, r_ref, w_ref, b_ref, o_ref, *,
                        taps, res_off, Ho, Wo, relu):
    """3x3 conv (folded BN) + identity shortcut + ReLU (fused epilogue)."""
    acc = _accum_taps(x_ref, w_ref, taps, Ho, Wo)
    cout = o_ref.shape[-1]
    rr, rc = res_off
    res = r_ref[0, rr:rr + Ho, rc:rc + Wo, :].astype(jnp.float32)
    acc = acc + res.reshape(Ho * Wo, cout) + b_ref[...]
    if relu:
        acc = jnp.maximum(acc, 0.0)
    o_ref[0] = acc.reshape(Ho, Wo, cout).astype(o_ref.dtype)


def _conv_bn_proj_kernel(x_ref, s_ref, w_ref, wsc_ref, b_ref, o_ref, *,
                         taps, sc_off, Ho, Wo, relu):
    """3x3 conv (folded BN) + fused 1x1 projection shortcut (folded BN) + ReLU."""
    acc = _accum_taps(x_ref, w_ref, taps, Ho, Wo)
    cin = wsc_ref.shape[0]
    sr, sc, sk = sc_off
    slab = _flatten_rows(s_ref[0, sr:sr + Ho, sc:sc + Wo, sk:sk + cin], Ho * Wo)
    acc = acc + jnp.dot(slab, wsc_ref[...], preferred_element_type=jnp.float32)
    acc = acc + b_ref[...]
    if relu:
        acc = jnp.maximum(acc, 0.0)
    cout = o_ref.shape[-1]
    o_ref[0] = acc.reshape(Ho, Wo, cout).astype(o_ref.dtype)


# ------------------------------ Pallas wrapper ------------------------------

def _conv_pallas(kernel, streamed, shared, out_shape, out_dtype):
    """Grid over batch (one image block per step, auto double-buffered);
    weights/bias resident via constant index_maps; VMEM budget derived from
    the actual block sizes (safe on v7x's 64 MiB VMEM)."""
    N = streamed[0].shape[0]
    in_specs, args = [], []
    for a in streamed:
        in_specs.append(pl.BlockSpec((1,) + a.shape[1:],
                                     lambda n: (n, 0, 0, 0)))
        args.append(a)
    for a in shared:
        in_specs.append(pl.BlockSpec(a.shape, lambda n, z=(0,) * a.ndim: z))
        args.append(a)
    out_spec = pl.BlockSpec((1,) + out_shape[1:], lambda n: (n, 0, 0, 0))

    block_bytes = sum(math.prod(a.shape[1:]) * a.dtype.itemsize for a in streamed)
    block_bytes += sum(a.size * a.dtype.itemsize for a in shared)
    block_bytes += math.prod(out_shape[1:]) * jnp.dtype(out_dtype).itemsize
    vmem_limit = int(min(64 * 2**20, max(32 * 2**20, 8 * block_bytes)))

    return pl.pallas_call(
        kernel,
        out_shape=jax.ShapeDtypeStruct(out_shape, out_dtype),
        grid=(N,),
        in_specs=in_specs,
        out_specs=out_spec,
        compiler_params=pltpu.CompilerParams(
            dimension_semantics=("parallel",),
            vmem_limit_bytes=vmem_limit),
    )(*args)


# -------------------- one-time parameter preparation ------------------------

def prepare_params(params, stride, *, compute_dtype=jnp.bfloat16,
                   lane_multiple=128, eps=1e-5):
    """Hoisted out of the per-step forward: PyTorch OIHW conv weights ->
    per-tap (kh*kw, Cin_pad, Cout_pad) matrices with the BN scale folded in,
    BN bias folded to a (1, Cout_pad) f32 epilogue vector, channels padded to
    the lane multiple, cast to the MXU compute dtype."""
    c_out, c_in = params["w1"].shape[0], params["w1"].shape[1]
    cp_in = _round_up(c_in, lane_multiple)
    cp_out = _round_up(c_out, lane_multiple)

    def fold(w, bn, cpi, cpo):
        gamma, beta, mean, var = bn
        scale = gamma * lax.rsqrt(var + eps)
        bias = (beta - mean * scale).reshape(1, -1)
        co, ci, kh, kw = w.shape
        wm = jnp.transpose(w, (2, 3, 1, 0)).reshape(kh * kw, ci, co) * scale
        wm = jnp.pad(wm, ((0, 0), (0, cpi - ci), (0, cpo - co)))
        bias = jnp.pad(bias, ((0, 0), (0, cpo - co)))
        return wm.astype(compute_dtype), bias.astype(jnp.float32)

    w1, b1 = fold(params["w1"], params["bn1"], cp_in, cp_out)
    w2, b2 = fold(params["w2"], params["bn2"], cp_out, cp_out)
    prep = {"w1": w1, "b1": b1, "w2": w2, "b2": b2}
    if stride != 1 or c_in != c_out:
        wsc, bsc = fold(params["w_sc"], params["bn_sc"], cp_in, cp_out)
        prep["wsc"] = wsc[0]           # (cp_in, cp_out) 1x1 projection weight
        prep["b2"] = b2 + bsc          # shortcut BN bias folded into epilogue
    return prep


# ------------------------------- forward ------------------------------------

def residual_block_forward(x_nchw, prep, stride, c_out):
    """ResidualBlock forward (inference).  Input/output in PyTorch NCHW."""
    s = stride
    compute_dtype = prep["w1"].dtype
    cp_in = prep["w1"].shape[1]
    cp_out = prep["w1"].shape[2]

    # NCHW -> NHWC at the module boundary (hoist per-network in real models).
    x = jnp.transpose(x_nchw, (0, 2, 3, 1))
    N, H, W, c_in = x.shape
    Ho = (H - 1) // s + 1
    Wo = (W - 1) // s + 1
    ext = 2 // s                      # extra halo rows/cols per stride phase
    Hs, Ws = Ho + ext, Wo + ext

    # conv1 input: channel-pad, zero-pad spatially, phase-split by stride.
    # One cheap pass over x (the smallest tensor in the block); no 9x patches.
    xc = jnp.pad(x.astype(compute_dtype),
                 ((0, 0), (1, 1), (1, 1), (0, cp_in - c_in)))
    if s == 1:
        x_in = xc
    else:
        phases = []
        for p in range(s):
            for q in range(s):
                ph = xc[:, p::s, q::s, :][:, :Hs, :Ws, :]
                pad_h, pad_w = Hs - ph.shape[1], Ws - ph.shape[2]
                if pad_h or pad_w:
                    ph = jnp.pad(ph, ((0, 0), (0, pad_h), (0, pad_w), (0, 0)))
                phases.append(ph)
        x_in = jnp.concatenate(phases, axis=-1)
    # tap (di, dj) reads phase (di % s, dj % s) at spatial offset (di//s, dj//s)
    taps1 = [(di // s, dj // s, ((di % s) * s + (dj % s)) * cp_in)
             for di in range(3) for dj in range(3)]

    # conv3x3(stride) + BN1 + ReLU -> compute-dtype y1 (bf16 in the perf config)
    y1 = _conv_pallas(
        functools.partial(_conv_bn_kernel, taps=taps1, Ho=Ho, Wo=Wo, relu=True),
        streamed=[x_in], shared=[prep["w1"], prep["b1"]],
        out_shape=(N, Ho, Wo, cp_out), out_dtype=compute_dtype)

    # spatial halo for conv2 (cheap; removed once conv1->conv2 is fully fused).
    y1p = jnp.pad(y1, ((0, 0), (1, 1), (1, 1), (0, 0)))

    # conv3x3(1) + BN2 + shortcut + ReLU (single fused kernel).
    taps2 = [(di, dj, 0) for di in range(3) for dj in range(3)]
    if "wsc" in prep:                 # projection shortcut (1x1, stride s)
        p_sc = 1 % s
        off_sc = (1 - p_sc) // s
        sc_off = (off_sc, off_sc, (p_sc * s + p_sc) * cp_in)
        out = _conv_pallas(
            functools.partial(_conv_bn_proj_kernel, taps=taps2, sc_off=sc_off,
                              Ho=Ho, Wo=Wo, relu=True),
            streamed=[y1p, x_in],
            shared=[prep["w2"], prep["wsc"], prep["b2"]],
            out_shape=(N, Ho, Wo, cp_out), out_dtype=jnp.float32)
    else:                             # identity shortcut
        out = _conv_pallas(
            functools.partial(_conv_bn_res_kernel, taps=taps2, res_off=(1, 1),
                              Ho=Ho, Wo=Wo, relu=True),
            streamed=[y1p, x_in],
            shared=[prep["w2"], prep["b2"]],
            out_shape=(N, Ho, Wo, cp_out), out_dtype=jnp.float32)

    # Dropout(0.5): eval-mode identity (no-op).
    # Module boundary: strip channel padding, back to NCHW.
    return jnp.transpose(out[..., :c_out], (0, 3, 1, 2))


# --------------------------- deterministic params ---------------------------

def init_params(key, c_in, c_out):
    ks = jax.random.split(key, 6)

    def conv_w(k, co, ci, kh, kw):
        return 0.1 * jax.random.normal(k, (co, ci, kh, kw), jnp.float32)

    def bn_p(k, c):
        k1, k2, k3, k4 = jax.random.split(k, 4)
        gamma = 1.0 + 0.1 * jax.random.normal(k1, (c,), jnp.float32)
        beta = 0.1 * jax.random.normal(k2, (c,), jnp.float32)
        mean = 0.1 * jax.random.normal(k3, (c,), jnp.float32)
        var = jnp.abs(jax.random.normal(k4, (c,), jnp.float32)) + 0.5
        return (gamma, beta, mean, var)

    return {
        "w1": conv_w(ks[0], c_out, c_in, 3, 3),
        "bn1": bn_p(ks[1], c_out),
        "w2": conv_w(ks[2], c_out, c_out, 3, 3),
        "bn2": bn_p(ks[3], c_out),
        "w_sc": conv_w(ks[4], c_out, c_in, 1, 1),
        "bn_sc": bn_p(ks[5], c_out),
    }


# ------------------------------ pure-JAX reference ---------------------------

def ref_forward(x_nchw, params, stride, eps=1e-5):
    x = jnp.transpose(x_nchw, (0, 2, 3, 1))

    def conv(x, w, s, pad):
        return lax.conv_general_dilated(
            x, jnp.transpose(w, (2, 3, 1, 0)),
            window_strides=(s, s), padding=[(pad, pad), (pad, pad)],
            dimension_numbers=("NHWC", "HWIO", "NHWC"))

    def bn(y, p):
        g, b, m, v = p
        return (y - m) / jnp.sqrt(v + eps) * g + b

    out = jax.nn.relu(bn(conv(x, params["w1"], stride, 1), params["bn1"]))
    out = bn(conv(out, params["w2"], 1, 1), params["bn2"])
    c_in, c_out = x.shape[-1], params["w1"].shape[0]
    if stride != 1 or c_in != c_out:
        sc = bn(conv(x, params["w_sc"], stride, 0), params["bn_sc"])
    else:
        sc = x
    out = jax.nn.relu(out + sc)
    return jnp.transpose(out, (0, 3, 1, 2))


# ------------------------------------ main -----------------------------------

if __name__ == "__main__":
    forward = jax.jit(residual_block_forward, static_argnums=(2, 3))

    key = jax.random.PRNGKey(0)
    kx, kp, kx2, kp2 = jax.random.split(key, 4)

    # Config A: projection shortcut (stride=2, channel change).
    N, C_in, H, W = 2, 4, 16, 16
    C_out, stride = 8, 2
    x = jax.random.normal(kx, (N, C_in, H, W), jnp.float32)   # PyTorch NCHW
    params = init_params(kp, C_in, C_out)
    ref = ref_forward(x, params, stride)

    # f32 MXU operands: tight check against the pure-JAX reference.
    prep_f32 = prepare_params(params, stride, compute_dtype=jnp.float32)
    out = jax.block_until_ready(forward(x, prep_f32, stride, C_out))
    assert out.shape == (N, C_out, H // stride, W // stride), out.shape
    err = float(jnp.max(jnp.abs(out - ref)))
    assert err < 5e-4, f"projection/f32 max abs error {err}"

    # Config B: identity shortcut (stride=1, same channels).
    x2 = jax.random.normal(kx2, (N, C_out, H, W), jnp.float32)
    params2 = init_params(kp2, C_out, C_out)
    prep2_f32 = prepare_params(params2, 1, compute_dtype=jnp.float32)
    out2 = jax.block_until_ready(forward(x2, prep2_f32, 1, C_out))
    ref2 = ref_forward(x2, params2, 1)
    assert out2.shape == (N, C_out, H, W), out2.shape
    err2 = float(jnp.max(jnp.abs(out2 - ref2)))
    assert err2 < 5e-4, f"identity/f32 max abs error {err2}"

    # Config A with bf16 MXU operands and bf16 intermediate y1 (perf config):
    # f32 accumulation + f32 epilogue -> only bf16 operand rounding vs ref.
    prep_bf16 = prepare_params(params, stride, compute_dtype=jnp.bfloat16)
    out_bf = jax.block_until_ready(forward(x, prep_bf16, stride, C_out))
    err_bf = float(jnp.max(jnp.abs(out_bf - ref)))
    assert err_bf < 2e-1, f"projection/bf16 max abs error {err_bf}"

    print("KERNEL_OK")
</pallas_src>

<mosaic_0001>
module attributes {stable_mosaic.version = 11 : i64} {
  func.func @_conv_bn_kernel(%arg0: i32, %arg1: memref<1x9x9x512xf32, #tpu.memory_space<vmem>>, %arg2: memref<9x128x128xf32, #tpu.memory_space<vmem>>, %arg3: memref<1x128xf32, #tpu.memory_space<vmem>>, %arg4: memref<1x8x8x128xf32, #tpu.memory_space<vmem>>) attributes {dimension_semantics = [#tpu.dimension_semantics<parallel>], iteration_bounds = array<i64: 2>, scalar_prefetch = 0 : i64, scratch_operands = 0 : i64, tpu.core_type = #tpu.core_type<tc>, window_params = [{transform_indices = @transform_0, window_bounds = array<i64: 1, 9, 9, 512>}, {pipeline_mode = #tpu.pipeline_mode<synchronous>, transform_indices = @transform_1, window_bounds = array<i64: 9, 128, 128>}, {pipeline_mode = #tpu.pipeline_mode<synchronous>, transform_indices = @transform_2, window_bounds = array<i64: 1, 128>}, {transform_indices = @transform_3, window_bounds = array<i64: 1, 8, 8, 128>}]} {
    %c0 = arith.constant 0 : index
    %c0_0 = arith.constant 0 : index
    %c0_1 = arith.constant 0 : index
    %c0_2 = arith.constant 0 : index
    %0 = vector.load %arg1[%c0, %c0_0, %c0_1, %c0_2] : memref<1x9x9x512xf32, #tpu.memory_space<vmem>>, vector<1x8x8x128xf32>
    %1 = vector.shape_cast %0 : vector<1x8x8x128xf32> to vector<8x8x128xf32>
    %2 = vector.shape_cast %1 : vector<8x8x128xf32> to vector<64x128xf32>
    %c0_3 = arith.constant 0 : index
    %c0_4 = arith.constant 0 : index
    %c0_5 = arith.constant 0 : index
    %3 = vector.load %arg2[%c0_3, %c0_4, %c0_5] : memref<9x128x128xf32, #tpu.memory_space<vmem>>, vector<1x128x128xf32>
    %4 = vector.shape_cast %3 : vector<1x128x128xf32> to vector<128x128xf32>
    %cst = arith.constant dense<0.000000e+00> : vector<64x128xf32>
    %5 = tpu.matmul %2, %4, %cst {dimension_numbers = #tpu.dot_dimension_numbers<[1], [0], [0], [1], [0, 0, 1, 1], [], []>} : vector<64x128xf32>, vector<128x128xf32>, vector<64x128xf32> -> vector<64x128xf32>
    %c0_6 = arith.constant 0 : index
    %c0_7 = arith.constant 0 : index
    %c0_8 = arith.constant 0 : index
    %c128 = arith.constant 128 : index
    %6 = vector.load %arg1[%c0_6, %c0_7, %c0_8, %c128] : memref<1x9x9x512xf32, #tpu.memory_space<vmem>>, vector<1x8x8x128xf32>
    %7 = vector.shape_cast %6 : vector<1x8x8x128xf32> to vector<8x8x128xf32>
    %8 = vector.shape_cast %7 : vector<8x8x128xf32> to vector<64x128xf32>
    %c1 = arith.constant 1 : index
    %c0_9 = arith.constant 0 : index
    %c0_10 = arith.constant 0 : index
    %9 = vector.load %arg2[%c1, %c0_9, %c0_10] : memref<9x128x128xf32, #tpu.memory_space<vmem>>, vector<1x128x128xf32>
    %10 = vector.shape_cast %9 : vector<1x128x128xf32> to vector<128x128xf32>
    %cst_11 = arith.constant dense<0.000000e+00> : vector<64x128xf32>
    %11 = tpu.matmul %8, %10, %cst_11 {dimension_numbers = #tpu.dot_dimension_numbers<[1], [0], [0], [1], [0, 0, 1, 1], [], []>} : vector<64x128xf32>, vector<128x128xf32>, vector<64x128xf32> -> vector<64x128xf32>
    %12 = arith.addf %5, %11 : vector<64x128xf32>
    %c0_12 = arith.constant 0 : index
    %c0_13 = arith.constant 0 : index
    %c1_14 = arith.constant 1 : index
    %c0_15 = arith.constant 0 : index
    %13 = vector.load %arg1[%c0_12, %c0_13, %c1_14, %c0_15] : memref<1x9x9x512xf32, #tpu.memory_space<vmem>>, vector<1x8x8x128xf32>
    %14 = vector.shape_cast %13 : vector<1x8x8x128xf32> to vector<8x8x128xf32>
    %15 = vector.shape_cast %14 : vector<8x8x128xf32> to vector<64x128xf32>
    %c2 = arith.constant 2 : index
    %c0_16 = arith.constant 0 : index
    %c0_17 = arith.constant 0 : index
    %16 = vector.load %arg2[%c2, %c0_16, %c0_17] : memref<9x128x128xf32, #tpu.memory_space<vmem>>, vector<1x128x128xf32>
    %17 = vector.shape_cast %16 : vector<1x128x128xf32> to vector<128x128xf32>
    %cst_18 = arith.constant dense<0.000000e+00> : vector<64x128xf32>
    %18 = tpu.matmul %15, %17, %cst_18 {dimension_numbers = #tpu.dot_dimension_numbers<[1], [0], [0], [1], [0, 0, 1, 1], [], []>} : vector<64x128xf32>, vector<128x128xf32>, vector<64x128xf32> -> vector<64x128xf32>
    %19 = arith.addf %12, %18 : vector<64x128xf32>
    %c0_19 = arith.constant 0 : index
    %c0_20 = arith.constant 0 : index
    %c0_21 = arith.constant 0 : index
    %c256 = arith.constant 256 : index
    %20 = vector.load %arg1[%c0_19, %c0_20, %c0_21, %c256] : memref<1x9x9x512xf32, #tpu.memory_space<vmem>>, vector<1x8x8x128xf32>
    %21 = vector.shape_cast %20 : vector<1x8x8x128xf32> to vector<8x8x128xf32>
    %22 = vector.shape_cast %21 : vector<8x8x128xf32> to vector<64x128xf32>
    %c3 = arith.constant 3 : index
    %c0_22 = arith.constant 0 : index
    %c0_23 = arith.constant 0 : index
    %23 = vector.load %arg2[%c3, %c0_22, %c0_23] : memref<9x128x128xf32, #tpu.memory_space<vmem>>, vector<1x128x128xf32>
    %24 = vector.shape_cast %23 : vector<1x128x128xf32> to vector<128x128xf32>
    %cst_24 = arith.constant dense<0.000000e+00> : vector<64x128xf32>
    %25 = tpu.matmul %22, %24, %cst_24 {dimension_numbers = #tpu.dot_dimension_numbers<[1], [0], [0], [1], [0, 0, 1, 1], [], []>} : vector<64x128xf32>, vector<128x128xf32>, vector<64x128xf32> -> vector<64x128xf32>
    %26 = arith.addf %19, %25 : vector<64x128xf32>
    %c0_25 = arith.constant 0 : index
    %c0_26 = arith.constant 0 : index
    %c0_27 = arith.constant 0 : index
    %c384 = arith.constant 384 : index
    %27 = vector.load %arg1[%c0_25, %c0_26, %c0_27, %c384] : memref<1x9x9x512xf32, #tpu.memory_space<vmem>>, vector<1x8x8x128xf32>
    %28 = vector.shape_cast %27 : vector<1x8x8x128xf32> to vector<8x8x128xf32>
    %29 = vector.shape_cast %28 : vector<8x8x128xf32> to vector<64x128xf32>
    %c4 = arith.constant 4 : index
    %c0_28 = arith.constant 0 : index
    %c0_29 = arith.constant 0 : index
    %30 = vector.load %arg2[%c4, %c0_28, %c0_29] : memref<9x128x128xf32, #tpu.memory_space<vmem>>, vector<1x128x128xf32>
    %31 = vector.shape_cast %30 : vector<1x128x128xf32> to vector<128x128xf32>
    %cst_30 = arith.constant dense<0.000000e+00> : vector<64x128xf32>
    %32 = tpu.matmul %29, %31, %cst_30 {dimension_numbers = #tpu.dot_dimension_numbers<[1], [0], [0], [1], [0, 0, 1, 1], [], []>} : vector<64x128xf32>, vector<128x128xf32>, vector<64x128xf32> -> vector<64x128xf32>
    %33 = arith.addf %26, %32 : vector<64x128xf32>
    %c0_31 = arith.constant 0 : index
    %c0_32 = arith.constant 0 : index
    %c1_33 = arith.constant 1 : index
    %c256_34 = arith.constant 256 : index
    %34 = vector.load %arg1[%c0_31, %c0_32, %c1_33, %c256_34] : memref<1x9x9x512xf32, #tpu.memory_space<vmem>>, vector<1x8x8x128xf32>
    %35 = vector.shape_cast %34 : vector<1x8x8x128xf32> to vector<8x8x128xf32>
    %36 = vector.shape_cast %35 : vector<8x8x128xf32> to vector<64x128xf32>
    %c5 = arith.constant 5 : index
    %c0_35 = arith.constant 0 : index
    %c0_36 = arith.constant 0 : index
    %37 = vector.load %arg2[%c5, %c0_35, %c0_36] : memref<9x128x128xf32, #tpu.memory_space<vmem>>, vector<1x128x128xf32>
    %38 = vector.shape_cast %37 : vector<1x128x128xf32> to vector<128x128xf32>
    %cst_37 = arith.constant dense<0.000000e+00> : vector<64x128xf32>
    %39 = tpu.matmul %36, %38, %cst_37 {dimension_numbers = #tpu.dot_dimension_numbers<[1], [0], [0], [1], [0, 0, 1, 1], [], []>} : vector<64x128xf32>, vector<128x128xf32>, vector<64x128xf32> -> vector<64x128xf32>
    %40 = arith.addf %33, %39 : vector<64x128xf32>
    %c0_38 = arith.constant 0 : index
    %c1_39 = arith.constant 1 : index
    %c0_40 = arith.constant 0 : index
    %c0_41 = arith.constant 0 : index
    %41 = vector.load %arg1[%c0_38, %c1_39, %c0_40, %c0_41] : memref<1x9x9x512xf32, #tpu.memory_space<vmem>>, vector<1x8x8x128xf32>
    %42 = vector.shape_cast %41 : vector<1x8x8x128xf32> to vector<8x8x128xf32>
    %43 = vector.shape_cast %42 : vector<8x8x128xf32> to vector<64x128xf32>
    %c6 = arith.constant 6 : index
    %c0_42 = arith.constant 0 : index
    %c0_43 = arith.constant 0 : index
    %44 = vector.load %arg2[%c6, %c0_42, %c0_43] : memref<9x128x128xf32, #tpu.memory_space<vmem>>, vector<1x128x128xf32>
    %45 = vector.shape_cast %44 : vector<1x128x128xf32> to vector<128x128xf32>
    %cst_44 = arith.constant dense<0.000000e+00> : vector<64x128xf32>
    %46 = tpu.matmul %43, %45, %cst_44 {dimension_numbers = #tpu.dot_dimension_numbers<[1], [0], [0], [1], [0, 0, 1, 1], [], []>} : vector<64x128xf32>, vector<128x128xf32>, vector<64x128xf32> -> vector<64x128xf32>
    %47 = arith.addf %40, %46 : vector<64x128xf32>
    %c0_45 = arith.constant 0 : index
    %c1_46 = arith.constant 1 : index
    %c0_47 = arith.constant 0 : index
    %c128_48 = arith.constant 128 : index
    %48 = vector.load %arg1[%c0_45, %c1_46, %c0_47, %c128_48] : memref<1x9x9x512xf32, #tpu.memory_space<vmem>>, vector<1x8x8x128xf32>
    %49 = vector.shape_cast %48 : vector<1x8x8x128xf32> to vector<8x8x128xf32>
    %50 = vector.shape_cast %49 : vector<8x8x128xf32> to vector<64x128xf32>
    %c7 = arith.constant 7 : index
    %c0_49 = arith.constant 0 : index
    %c0_50 = arith.constant 0 : index
    %51 = vector.load %arg2[%c7, %c0_49, %c0_50] : memref<9x128x128xf32, #tpu.memory_space<vmem>>, vector<1x128x128xf32>
    %52 = vector.shape_cast %51 : vector<1x128x128xf32> to vector<128x128xf32>
    %cst_51 = arith.constant dense<0.000000e+00> : vector<64x128xf32>
    %53 = tpu.matmul %50, %52, %cst_51 {dimension_numbers = #tpu.dot_dimension_numbers<[1], [0], [0], [1], [0, 0, 1, 1], [], []>} : vector<64x128xf32>, vector<128x128xf32>, vector<64x128xf32> -> vector<64x128xf32>
    %54 = arith.addf %47, %53 : vector<64x128xf32>
    %c0_52 = arith.constant 0 : index
    %c1_53 = arith.constant 1 : index
    %c1_54 = arith.constant 1 : index
    %c0_55 = arith.constant 0 : index
    %55 = vector.load %arg1[%c0_52, %c1_53, %c1_54, %c0_55] : memref<1x9x9x512xf32, #tpu.memory_space<vmem>>, vector<1x8x8x128xf32>
    %56 = vector.shape_cast %55 : vector<1x8x8x128xf32> to vector<8x8x128xf32>
    %57 = vector.shape_cast %56 : vector<8x8x128xf32> to vector<64x128xf32>
    %c8 = arith.constant 8 : index
    %c0_56 = arith.constant 0 : index
    %c0_57 = arith.constant 0 : index
    %58 = vector.load %arg2[%c8, %c0_56, %c0_57] : memref<9x128x128xf32, #tpu.memory_space<vmem>>, vector<1x128x128xf32>
    %59 = vector.shape_cast %58 : vector<1x128x128xf32> to vector<128x128xf32>
    %cst_58 = arith.constant dense<0.000000e+00> : vector<64x128xf32>
    %60 = tpu.matmul %57, %59, %cst_58 {dimension_numbers = #tpu.dot_dimension_numbers<[1], [0], [0], [1], [0, 0, 1, 1], [], []>} : vector<64x128xf32>, vector<128x128xf32>, vector<64x128xf32> -> vector<64x128xf32>
    %61 = arith.addf %54, %60 : vector<64x128xf32>
    %c0_59 = arith.constant 0 : index
    %c0_60 = arith.constant 0 : index
    %62 = vector.load %arg3[%c0_59, %c0_60] : memref<1x128xf32, #tpu.memory_space<vmem>>, vector<1x128xf32>
    %63 = vector.broadcast %62 : vector<1x128xf32> to vector<64x128xf32>
    %64 = arith.addf %61, %63 : vector<64x128xf32>
    %cst_61 = arith.constant 0.000000e+00 : f32
    %65 = vector.broadcast %cst_61 : f32 to vector<64x128xf32>
    %66 = arith.maximumf %64, %65 : vector<64x128xf32>
    %67 = vector.shape_cast %66 : vector<64x128xf32> to vector<8x8x128xf32>
    %c0_62 = arith.constant 0 : index
    %c0_63 = arith.constant 0 : index
    %c0_64 = arith.constant 0 : index
    %c0_65 = arith.constant 0 : index
    %68 = vector.load %arg4[%c0_62, %c0_63, %c0_64, %c0_65] : memref<1x8x8x128xf32, #tpu.memory_space<vmem>>, vector<1x8x8x128xf32>
    %69 = vector.shape_cast %68 : vector<1x8x8x128xf32> to vector<8x8x128xf32>
    %70 = vector.shape_cast %67 : vector<8x8x128xf32> to vector<1x8x8x128xf32>
    tpu.vector_store %arg4[%c0_62, %c0_63, %c0_64, %c0_65], %70 {strides = array<i32>} : memref<1x8x8x128xf32, #tpu.memory_space<vmem>>, vector<1x8x8x128xf32>,
    return
  }
  func.func @transform_0(%arg0: i32) -> (i32, i32, i32, i32) {
    %c0_i32 = arith.constant 0 : i32
    %c0_i32_0 = arith.constant 0 : i32
    %c0_i32_1 = arith.constant 0 : i32
    %c0_i32_2 = arith.constant 0 : i32
    return %arg0, %c0_i32, %c0_i32_0, %c0_i32_1 : i32, i32, i32, i32
  }
  func.func @transform_1(%arg0: i32) -> (i32, i32, i32) {
    %c0_i32 = arith.constant 0 : i32
    %c0_i32_0 = arith.constant 0 : i32
    %c0_i32_1 = arith.constant 0 : i32
    %c0_i32_2 = arith.constant 0 : i32
    return %c0_i32, %c0_i32_0, %c0_i32_1 : i32, i32, i32
  }
  func.func @transform_2(%arg0: i32) -> (i32, i32) {
    %c0_i32 = arith.constant 0 : i32
    %c0_i32_0 = arith.constant 0 : i32
    %c0_i32_1 = arith.constant 0 : i32
    return %c0_i32, %c0_i32_0 : i32, i32
  }
  func.func @transform_3(%arg0: i32) -> (i32, i32, i32, i32) {
    %c0_i32 = arith.constant 0 : i32
    %c0_i32_0 = arith.constant 0 : i32
    %c0_i32_1 = arith.constant 0 : i32
    %c0_i32_2 = arith.constant 0 : i32
    return %arg0, %c0_i32, %c0_i32_0, %c0_i32_1 : i32, i32, i32, i32
  }
}

module attributes {stable_mosaic.version = 11 : i64} {
  func.func @_conv_bn_proj_kernel(%arg0: i32, %arg1: memref<1x10x10x128xf32, #tpu.memory_space<vmem>>, %arg2: memref<1x9x9x512xf32, #tpu.memory_space<vmem>>, %arg3: memref<9x128x128xf32, #tpu.memory_space<vmem>>, %arg4: memref<128x128xf32, #tpu.memory_space<vmem>>, %arg5: memref<1x128xf32, #tpu.memory_space<vmem>>, %arg6: memref<1x8x8x128xf32, #tpu.memory_space<vmem>>) attributes {dimension_semantics = [#tpu.dimension_semantics<parallel>], iteration_bounds = array<i64: 2>, scalar_prefetch = 0 : i64, scratch_operands = 0 : i64, tpu.core_type = #tpu.core_type<tc>, window_params = [{transform_indices = @transform_0, window_bounds = array<i64: 1, 10, 10, 128>}, {transform_indices = @transform_1, window_bounds = array<i64: 1, 9, 9, 512>}, {pipeline_mode = #tpu.pipeline_mode<synchronous>, transform_indices = @transform_2, window_bounds = array<i64: 9, 128, 128>}, {pipeline_mode = #tpu.pipeline_mode<synchronous>, transform_indices = @transform_3, window_bounds = array<i64: 128, 128>}, {pipeline_mode = #tpu.pipeline_mode<synchronous>, transform_indices = @transform_4, window_bounds = array<i64: 1, 128>}, {transform_indices = @transform_5, window_bounds = array<i64: 1, 8, 8, 128>}]} {
    %c0 = arith.constant 0 : index
    %c0_0 = arith.constant 0 : index
    %c0_1 = arith.constant 0 : index
    %c0_2 = arith.constant 0 : index
    %0 = vector.load %arg1[%c0, %c0_0, %c0_1, %c0_2] : memref<1x10x10x128xf32, #tpu.memory_space<vmem>>, vector<1x8x8x128xf32>
    %1 = vector.shape_cast %0 : vector<1x8x8x128xf32> to vector<8x8x128xf32>
    %2 = vector.shape_cast %1 : vector<8x8x128xf32> to vector<64x128xf32>
    %c0_3 = arith.constant 0 : index
    %c0_4 = arith.constant 0 : index
    %c0_5 = arith.constant 0 : index
    %3 = vector.load %arg3[%c0_3, %c0_4, %c0_5] : memref<9x128x128xf32, #tpu.memory_space<vmem>>, vector<1x128x128xf32>
    %4 = vector.shape_cast %3 : vector<1x128x128xf32> to vector<128x128xf32>
    %cst = arith.constant dense<0.000000e+00> : vector<64x128xf32>
    %5 = tpu.matmul %2, %4, %cst {dimension_numbers = #tpu.dot_dimension_numbers<[1], [0], [0], [1], [0, 0, 1, 1], [], []>} : vector<64x128xf32>, vector<128x128xf32>, vector<64x128xf32> -> vector<64x128xf32>
    %c0_6 = arith.constant 0 : index
    %c0_7 = arith.constant 0 : index
    %c1 = arith.constant 1 : index
    %c0_8 = arith.constant 0 : index
    %6 = vector.load %arg1[%c0_6, %c0_7, %c1, %c0_8] : memref<1x10x10x128xf32, #tpu.memory_space<vmem>>, vector<1x8x8x128xf32>
    %7 = vector.shape_cast %6 : vector<1x8x8x128xf32> to vector<8x8x128xf32>
    %8 = vector.shape_cast %7 : vector<8x8x128xf32> to vector<64x128xf32>
    %c1_9 = arith.constant 1 : index
    %c0_10 = arith.constant 0 : index
    %c0_11 = arith.constant 0 : index
    %9 = vector.load %arg3[%c1_9, %c0_10, %c0_11] : memref<9x128x128xf32, #tpu.memory_space<vmem>>, vector<1x128x128xf32>
    %10 = vector.shape_cast %9 : vector<1x128x128xf32> to vector<128x128xf32>
    %cst_12 = arith.constant dense<0.000000e+00> : vector<64x128xf32>
    %11 = tpu.matmul %8, %10, %cst_12 {dimension_numbers = #tpu.dot_dimension_numbers<[1], [0], [0], [1], [0, 0, 1, 1], [], []>} : vector<64x128xf32>, vector<128x128xf32>, vector<64x128xf32> -> vector<64x128xf32>
    %12 = arith.addf %5, %11 : vector<64x128xf32>
    %c0_13 = arith.constant 0 : index
    %c0_14 = arith.constant 0 : index
    %c2 = arith.constant 2 : index
    %c0_15 = arith.constant 0 : index
    %13 = vector.load %arg1[%c0_13, %c0_14, %c2, %c0_15] : memref<1x10x10x128xf32, #tpu.memory_space<vmem>>, vector<1x8x8x128xf32>
    %14 = vector.shape_cast %13 : vector<1x8x8x128xf32> to vector<8x8x128xf32>
    %15 = vector.shape_cast %14 : vector<8x8x128xf32> to vector<64x128xf32>
    %c2_16 = arith.constant 2 : index
    %c0_17 = arith.constant 0 : index
    %c0_18 = arith.constant 0 : index
    %16 = vector.load %arg3[%c2_16, %c0_17, %c0_18] : memref<9x128x128xf32, #tpu.memory_space<vmem>>, vector<1x128x128xf32>
    %17 = vector.shape_cast %16 : vector<1x128x128xf32> to vector<128x128xf32>
    %cst_19 = arith.constant dense<0.000000e+00> : vector<64x128xf32>
    %18 = tpu.matmul %15, %17, %cst_19 {dimension_numbers = #tpu.dot_dimension_numbers<[1], [0], [0], [1], [0, 0, 1, 1], [], []>} : vector<64x128xf32>, vector<128x128xf32>, vector<64x128xf32> -> vector<64x128xf32>
    %19 = arith.addf %12, %18 : vector<64x128xf32>
    %c0_20 = arith.constant 0 : index
    %c1_21 = arith.constant 1 : index
    %c0_22 = arith.constant 0 : index
    %c0_23 = arith.constant 0 : index
    %20 = vector.load %arg1[%c0_20, %c1_21, %c0_22, %c0_23] : memref<1x10x10x128xf32, #tpu.memory_space<vmem>>, vector<1x8x8x128xf32>
    %21 = vector.shape_cast %20 : vector<1x8x8x128xf32> to vector<8x8x128xf32>
    %22 = vector.shape_cast %21 : vector<8x8x128xf32> to vector<64x128xf32>
    %c3 = arith.constant 3 : index
    %c0_24 = arith.constant 0 : index
    %c0_25 = arith.constant 0 : index
    %23 = vector.load %arg3[%c3, %c0_24, %c0_25] : memref<9x128x128xf32, #tpu.memory_space<vmem>>, vector<1x128x128xf32>
    %24 = vector.shape_cast %23 : vector<1x128x128xf32> to vector<128x128xf32>
    %cst_26 = arith.constant dense<0.000000e+00> : vector<64x128xf32>
    %25 = tpu.matmul %22, %24, %cst_26 {dimension_numbers = #tpu.dot_dimension_numbers<[1], [0], [0], [1], [0, 0, 1, 1], [], []>} : vector<64x128xf32>, vector<128x128xf32>, vector<64x128xf32> -> vector<64x128xf32>
    %26 = arith.addf %19, %25 : vector<64x128xf32>
    %c0_27 = arith.constant 0 : index
    %c1_28 = arith.constant 1 : index
    %c1_29 = arith.constant 1 : index
    %c0_30 = arith.constant 0 : index
    %27 = vector.load %arg1[%c0_27, %c1_28, %c1_29, %c0_30] : memref<1x10x10x128xf32, #tpu.memory_space<vmem>>, vector<1x8x8x128xf32>
    %28 = vector.shape_cast %27 : vector<1x8x8x128xf32> to vector<8x8x128xf32>
    %29 = vector.shape_cast %28 : vector<8x8x128xf32> to vector<64x128xf32>
    %c4 = arith.constant 4 : index
    %c0_31 = arith.constant 0 : index
    %c0_32 = arith.constant 0 : index
    %30 = vector.load %arg3[%c4, %c0_31, %c0_32] : memref<9x128x128xf32, #tpu.memory_space<vmem>>, vector<1x128x128xf32>
    %31 = vector.shape_cast %30 : vector<1x128x128xf32> to vector<128x128xf32>
    %cst_33 = arith.constant dense<0.000000e+00> : vector<64x128xf32>
    %32 = tpu.matmul %29, %31, %cst_33 {dimension_numbers = #tpu.dot_dimension_numbers<[1], [0], [0], [1], [0, 0, 1, 1], [], []>} : vector<64x128xf32>, vector<128x128xf32>, vector<64x128xf32> -> vector<64x128xf32>
    %33 = arith.addf %26, %32 : vector<64x128xf32>
    %c0_34 = arith.constant 0 : index
    %c1_35 = arith.constant 1 : index
    %c2_36 = arith.constant 2 : index
    %c0_37 = arith.constant 0 : index
    %34 = vector.load %arg1[%c0_34, %c1_35, %c2_36, %c0_37] : memref<1x10x10x128xf32, #tpu.memory_space<vmem>>, vector<1x8x8x128xf32>
    %35 = vector.shape_cast %34 : vector<1x8x8x128xf32> to vector<8x8x128xf32>
    %36 = vector.shape_cast %35 : vector<8x8x128xf32> to vector<64x128xf32>
    %c5 = arith.constant 5 : index
    %c0_38 = arith.constant 0 : index
    %c0_39 = arith.constant 0 : index
    %37 = vector.load %arg3[%c5, %c0_38, %c0_39] : memref<9x128x128xf32, #tpu.memory_space<vmem>>, vector<1x128x128xf32>
    %38 = vector.shape_cast %37 : vector<1x128x128xf32> to vector<128x128xf32>
    %cst_40 = arith.constant dense<0.000000e+00> : vector<64x128xf32>
    %39 = tpu.matmul %36, %38, %cst_40 {dimension_numbers = #tpu.dot_dimension_numbers<[1], [0], [0], [1], [0, 0, 1, 1], [], []>} : vector<64x128xf32>, vector<128x128xf32>, vector<64x128xf32> -> vector<64x128xf32>
    %40 = arith.addf %33, %39 : vector<64x128xf32>
    %c0_41 = arith.constant 0 : index
    %c2_42 = arith.constant 2 : index
    %c0_43 = arith.constant 0 : index
    %c0_44 = arith.constant 0 : index
    %41 = vector.load %arg1[%c0_41, %c2_42, %c0_43, %c0_44] : memref<1x10x10x128xf32, #tpu.memory_space<vmem>>, vector<1x8x8x128xf32>
    %42 = vector.shape_cast %41 : vector<1x8x8x128xf32> to vector<8x8x128xf32>
    %43 = vector.shape_cast %42 : vector<8x8x128xf32> to vector<64x128xf32>
    %c6 = arith.constant 6 : index
    %c0_45 = arith.constant 0 : index
    %c0_46 = arith.constant 0 : index
    %44 = vector.load %arg3[%c6, %c0_45, %c0_46] : memref<9x128x128xf32, #tpu.memory_space<vmem>>, vector<1x128x128xf32>
    %45 = vector.shape_cast %44 : vector<1x128x128xf32> to vector<128x128xf32>
    %cst_47 = arith.constant dense<0.000000e+00> : vector<64x128xf32>
    %46 = tpu.matmul %43, %45, %cst_47 {dimension_numbers = #tpu.dot_dimension_numbers<[1], [0], [0], [1], [0, 0, 1, 1], [], []>} : vector<64x128xf32>, vector<128x128xf32>, vector<64x128xf32> -> vector<64x128xf32>
    %47 = arith.addf %40, %46 : vector<64x128xf32>
    %c0_48 = arith.constant 0 : index
    %c2_49 = arith.constant 2 : index
    %c1_50 = arith.constant 1 : index
    %c0_51 = arith.constant 0 : index
    %48 = vector.load %arg1[%c0_48, %c2_49, %c1_50, %c0_51] : memref<1x10x10x128xf32, #tpu.memory_space<vmem>>, vector<1x8x8x128xf32>
    %49 = vector.shape_cast %48 : vector<1x8x8x128xf32> to vector<8x8x128xf32>
    %50 = vector.shape_cast %49 : vector<8x8x128xf32> to vector<64x128xf32>
    %c7 = arith.constant 7 : index
    %c0_52 = arith.constant 0 : index
    %c0_53 = arith.constant 0 : index
    %51 = vector.load %arg3[%c7, %c0_52, %c0_53] : memref<9x128x128xf32, #tpu.memory_space<vmem>>, vector<1x128x128xf32>
    %52 = vector.shape_cast %51 : vector<1x128x128xf32> to vector<128x128xf32>
    %cst_54 = arith.constant dense<0.000000e+00> : vector<64x128xf32>
    %53 = tpu.matmul %50, %52, %cst_54 {dimension_numbers = #tpu.dot_dimension_numbers<[1], [0], [0], [1], [0, 0, 1, 1], [], []>} : vector<64x128xf32>, vector<128x128xf32>, vector<64x128xf32> -> vector<64x128xf32>
    %54 = arith.addf %47, %53 : vector<64x128xf32>
    %c0_55 = arith.constant 0 : index
    %c2_56 = arith.constant 2 : index
    %c2_57 = arith.constant 2 : index
    %c0_58 = arith.constant 0 : index
    %55 = vector.load %arg1[%c0_55, %c2_56, %c2_57, %c0_58] : memref<1x10x10x128xf32, #tpu.memory_space<vmem>>, vector<1x8x8x128xf32>
    %56 = vector.shape_cast %55 : vector<1x8x8x128xf32> to vector<8x8x128xf32>
    %57 = vector.shape_cast %56 : vector<8x8x128xf32> to vector<64x128xf32>
    %c8 = arith.constant 8 : index
    %c0_59 = arith.constant 0 : index
    %c0_60 = arith.constant 0 : index
    %58 = vector.load %arg3[%c8, %c0_59, %c0_60] : memref<9x128x128xf32, #tpu.memory_space<vmem>>, vector<1x128x128xf32>
    %59 = vector.shape_cast %58 : vector<1x128x128xf32> to vector<128x128xf32>
    %cst_61 = arith.constant dense<0.000000e+00> : vector<64x128xf32>
    %60 = tpu.matmul %57, %59, %cst_61 {dimension_numbers = #tpu.dot_dimension_numbers<[1], [0], [0], [1], [0, 0, 1, 1], [], []>} : vector<64x128xf32>, vector<128x128xf32>, vector<64x128xf32> -> vector<64x128xf32>
    %61 = arith.addf %54, %60 : vector<64x128xf32>
    %c0_62 = arith.constant 0 : index
    %c0_63 = arith.constant 0 : index
    %c0_64 = arith.constant 0 : index
    %c384 = arith.constant 384 : index
    %62 = vector.load %arg2[%c0_62, %c0_63, %c0_64, %c384] : memref<1x9x9x512xf32, #tpu.memory_space<vmem>>, vector<1x8x8x128xf32>
    %63 = vector.shape_cast %62 : vector<1x8x8x128xf32> to vector<8x8x128xf32>
    %64 = vector.shape_cast %63 : vector<8x8x128xf32> to vector<64x128xf32>
    %c0_65 = arith.constant 0 : index
    %c0_66 = arith.constant 0 : index
    %65 = vector.load %arg4[%c0_65, %c0_66] : memref<128x128xf32, #tpu.memory_space<vmem>>, vector<128x128xf32>
    %cst_67 = arith.constant dense<0.000000e+00> : vector<64x128xf32>
    %66 = tpu.matmul %64, %65, %cst_67 {dimension_numbers = #tpu.dot_dimension_numbers<[1], [0], [0], [1], [0, 0, 1, 1], [], []>} : vector<64x128xf32>, vector<128x128xf32>, vector<64x128xf32> -> vector<64x128xf32>
    %67 = arith.addf %61, %66 : vector<64x128xf32>
    %c0_68 = arith.constant 0 : index
    %c0_69 = arith.constant 0 : index
    %68 = vector.load %arg5[%c0_68, %c0_69] : memref<1x128xf32, #tpu.memory_space<vmem>>, vector<1x128xf32>
    %69 = vector.broadcast %68 : vector<1x128xf32> to vector<64x128xf32>
    %70 = arith.addf %67, %69 : vector<64x128xf32>
    %cst_70 = arith.constant 0.000000e+00 : f32
    %71 = vector.broadcast %cst_70 : f32 to vector<64x128xf32>
    %72 = arith.maximumf %70, %71 : vector<64x128xf32>
    %73 = vector.shape_cast %72 : vector<64x128xf32> to vector<8x8x128xf32>
    %c0_71 = arith.constant 0 : index
    %c0_72 = arith.constant 0 : index
    %c0_73 = arith.constant 0 : index
    %c0_74 = arith.constant 0 : index
    %74 = vector.load %arg6[%c0_71, %c0_72, %c0_73, %c0_74] : memref<1x8x8x128xf32, #tpu.memory_space<vmem>>, vector<1x8x8x128xf32>
    %75 = vector.shape_cast %74 : vector<1x8x8x128xf32> to vector<8x8x128xf32>
    %76 = vector.shape_cast %73 : vector<8x8x128xf32> to vector<1x8x8x128xf32>
    tpu.vector_store %arg6[%c0_71, %c0_72, %c0_73, %c0_74], %76 {strides = array<i32>} : memref<1x8x8x128xf32, #tpu.memory_space<vmem>>, vector<1x8x8x128xf32>,
    return
  }
  func.func @transform_0(%arg0: i32) -> (i32, i32, i32, i32) {
    %c0_i32 = arith.constant 0 : i32
    %c0_i32_0 = arith.constant 0 : i32
    %c0_i32_1 = arith.constant 0 : i32
    %c0_i32_2 = arith.constant 0 : i32
    return %arg0, %c0_i32, %c0_i32_0, %c0_i32_1 : i32, i32, i32, i32
  }
  func.func @transform_1(%arg0: i32) -> (i32, i32, i32, i32) {
    %c0_i32 = arith.constant 0 : i32
    %c0_i32_0 = arith.constant 0 : i32
    %c0_i32_1 = arith.constant 0 : i32
    %c0_i32_2 = arith.constant 0 : i32
    return %arg0, %c0_i32, %c0_i32_0, %c0_i32_1 : i32, i32, i32, i32
  }
  func.func @transform_2(%arg0: i32) -> (i32, i32, i32) {
    %c0_i32 = arith.constant 0 : i32
    %c0_i32_0 = arith.constant 0 : i32
    %c0_i32_1 = arith.constant 0 : i32
    %c0_i32_2 = arith.constant 0 : i32
    return %c0_i32, %c0_i32_0, %c0_i32_1 : i32, i32, i32
  }
  func.func @transform_3(%arg0: i32) -> (i32, i32) {
    %c0_i32 = arith.constant 0 : i32
    %c0_i32_0 = arith.constant 0 : i32
    %c0_i32_1 = arith.constant 0 : i32
    return %c0_i32, %c0_i32_0 : i32, i32
  }
  func.func @transform_4(%arg0: i32) -> (i32, i32) {
    %c0_i32 = arith.constant 0 : i32
    %c0_i32_0 = arith.constant 0 : i32
    %c0_i32_1 = arith.constant 0 : i32
    return %c0_i32, %c0_i32_0 : i32, i32
  }
  func.func @transform_5(%arg0: i32) -> (i32, i32, i32, i32) {
    %c0_i32 = arith.constant 0 : i32
    %c0_i32_0 = arith.constant 0 : i32
    %c0_i32_1 = arith.constant 0 : i32
    %c0_i32_2 = arith.constant 0 : i32
    return %arg0, %c0_i32, %c0_i32_0, %c0_i32_1 : i32, i32, i32, i32
  }
}

</mosaic_0001>

<bundles_post_ra>
// kernel: residual_block_forward.3
= control target key start
LH: loop header
LB: loop body
LE: loop exit
PB: predicated region body
PF: predicated region fallthrough
CT: control target
= control target key end

     0   :  { %s3016_s18 = smov 0   ;;  %s3690_s0 = inlined_call_operand.vmem [shape: f32[2,10,10,128], index: 0, kind: input, shape index: {}]   ;;  %s3691_s1 = inlined_call_operand.vmem [shape: f32[2,9,9,512], index: 1, kind: input, shape index: {}]   ;;  %s3692_s2 = inlined_call_operand.vmem [shape: f32[9,128,128], index: 2, kind: input, shape index: {}]   ;;  %s3693_s3 = inlined_call_operand.vmem [shape: f32[128,128], index: 3, kind: input, shape index: {}]   ;;  %s3694_s4 = inlined_call_operand.vmem [shape: f32[1,128], index: 4, kind: input, shape index: {}]   ;;  %s3695_s5 = inlined_call_operand.vmem [shape: f32[2,8,8,128], index: 5, kind: output, shape index: {}]  }
   0x1 LB: > { %s1707_s19 = sadd.s32 4294967295, %s2984_s18   ;;  %p1711_p0 = scmp.ge.s32.totalorder %s2984_s18, 1  ;;  %s2984_s18 = sphi %s3016_s18, %s15_s18  }
   0x2   : > { %p197_p1 = scmp.lt.s32.totalorder %s2984_s18, 3 }
   0x4   : > { %p198_p2 = pnand %p1711_p0, %p197_p1 }
   0x5   : > { %v1716_v0 = vld [vmem:[%s3692_s2 + $0x80] sm:$0xff] (!%p198_p2)  ;;  %v1717_v1 = vld [vmem:[%s3692_s2 + $0x88] sm:$0xff] (!%p198_p2)  ;;  %p230_p3 = scmp.lt.s32.totalorder (!%p198_p2), %s1707_s19, 1  ;;  %v1718_v5 = vld [vmem:[%s3692_s2 + $0x90] sm:$0xff] (!%p198_p2) }
   0x6   : > { %201 = sbr.rel (%p198_p2) target bundleno = 402 (0x192), region = 40  ;;  %v1804_v2 = vld [vmem:[%s3692_s2 + $0x280] sm:$0xff] (!%p198_p2)  ;;  %v2576_v3 = vpack.c.bf16 (!%p198_p2), %v1717_v1, %v1716_v0  ;;  %v1805_v4 = vld [vmem:[%s3692_s2 + $0x288] sm:$0xff] (!%p198_p2)  ;;  %v1719_v6 = vld [vmem:[%s3692_s2 + $0x98] sm:$0xff] (!%p198_p2) }
   0x7   : > { %v2736_v7 = vpack.c.bf16 (!%p198_p2), %v1805_v4, %v1804_v2  ;;  %v2580_v8 = vpack.c.bf16 (!%p198_p2), %v1719_v6, %v1718_v5  ;;  %v1806_v9 = vld [vmem:[%s3692_s2 + $0x290] sm:$0xff] (!%p198_p2)  ;;  %v1807_v10 = vld [vmem:[%s3692_s2 + $0x298] sm:$0xff] (!%p198_p2)  ;;  %v1720_v11 = vld [vmem:[%s3692_s2 + $0xa0] sm:$0xff] (!%p198_p2) }
   0x8   : > { %2577 = vmatprep.subr.bf16.mxu1 (!%p198_p2), %v2576_v3  ;;  %v2740_v12 = vpack.c.bf16 (!%p198_p2), %v1807_v10, %v1806_v9  ;;  %v1721_v13 = vld [vmem:[%s3692_s2 + $0xa8] sm:$0xff] (!%p198_p2)  ;;  %v1808_v14 = vld [vmem:[%s3692_s2 + $0x2a0] sm:$0xff] (!%p198_p2)  ;;  %v1722_v18 = vld [vmem:[%s3692_s2 + $0xb0] sm:$0xff] (!%p198_p2) }
   0x9   : > { %v1809_v15 = vld [vmem:[%s3692_s2 + $0x2a8] sm:$0xff] (!%p198_p2)  ;;  %2737 = vmatprep.subr.bf16.mxu0 (!%p198_p2), %v2736_v7  ;;  %2579 = vmatpush3.bf16.msra.mxu1 (!%p198_p2), %v2576_v3  ;;  %v2584_v16 = vpack.c.bf16 (!%p198_p2), %v1721_v13, %v1720_v11  ;;  %v1723_v19 = vld [vmem:[%s3692_s2 + $0xb8] sm:$0xff] (!%p198_p2)  ;;  %v1810_v20 = vld [vmem:[%s3692_s2 + $0x2b0] sm:$0xff] (!%p198_p2) }
   0xa   : > { %2739 = vmatpush3.bf16.msra.mxu0 (!%p198_p2), %v2736_v7  ;;  %2581 = vmatprep.subr.bf16.mxu1 (!%p198_p2), %v2580_v8  ;;  %v2744_v17 = vpack.c.bf16 (!%p198_p2), %v1809_v15, %v1808_v14  ;;  %v1811_v21 = vld [vmem:[%s3692_s2 + $0x2b8] sm:$0xff] (!%p198_p2)  ;;  %v2588_v22 = vpack.c.bf16 (!%p198_p2), %v1723_v19, %v1722_v18  ;;  %v1724_v24 = vld [vmem:[%s3692_s2 + $0xc0] sm:$0xff] (!%p198_p2)  ;;  %v1725_v25 = vld [vmem:[%s3692_s2 + $0xc8] sm:$0xff] (!%p198_p2) }
   0xb   : > { %2741 = vmatprep.subr.bf16.mxu0 (!%p198_p2), %v2740_v12  ;;  %v2748_v23 = vpack.c.bf16 (!%p198_p2), %v1811_v21, %v1810_v20  ;;  %v1812_v27 = vld [vmem:[%s3692_s2 + $0x2c0] sm:$0xff] (!%p198_p2)  ;;  %v1813_v28 = vld [vmem:[%s3692_s2 + $0x2c8] sm:$0xff] (!%p198_p2)  ;;  %v2592_v30 = vpack.c.bf16 (!%p198_p2), %v1725_v25, %v1724_v24  ;;  %v1726_v32 = vld [vmem:[%s3692_s2 + $0xd0] sm:$0xff] (!%p198_p2) }
   0xc   : > { %v2752_v31 = vpack.c.bf16 (!%p198_p2), %v1813_v28, %v1812_v27  ;;  %v1727_v33 = vld [vmem:[%s3692_s2 + $0xd8] sm:$0xff] (!%p198_p2)  ;;  %v1814_v34 = vld [vmem:[%s3692_s2 + $0x2d0] sm:$0xff] (!%p198_p2)  ;;  %v1728_v38 = vld [vmem:[%s3692_s2 + $0xe0] sm:$0xff] (!%p198_p2) }
   0xd   : > { %s3697_s19 = smov (!%p230_p3, %s1707_s19), 1  ;;  %2583 = vmatpush3.bf16.msra.mxu1 %v2580_v8  ;;  %v1815_v35 = vld [vmem:[%s3692_s2 + $0x2d8] sm:$0xff]  ;;  %v2596_v36 = vpack.c.bf16 %v1727_v33, %v1726_v32  ;;  %v1729_v39 = vld [vmem:[%s3692_s2 + $0xe8] sm:$0xff]  ;;  %v1816_v40 = vld [vmem:[%s3692_s2 + $0x2e0] sm:$0xff] }
   0xe   : > { %s2968_s21 = smul.u32 160, %s3697_s19  ;;  %2743 = vmatpush3.bf16.msra.mxu0 %v2740_v12  ;;  %2585 = vmatprep.subr.bf16.mxu1 %v2584_v16  ;;  %v2756_v37 = vpack.c.bf16 %v1815_v35, %v1814_v34  ;;  %v1817_v41 = vld [vmem:[%s3692_s2 + $0x2e8] sm:$0xff]  ;;  %v2600_v42 = vpack.c.bf16 %v1729_v39, %v1728_v38  ;;  %v1730_v44 = vld [vmem:[%s3692_s2 + $0xf0] sm:$0xff]  ;;  %v1731_v45 = vld [vmem:[%s3692_s2 + $0xf8] sm:$0xff]  ;;  %s1895_s16 = sshll.u32 %s3697_s19, 6 }
   0xf   : > { %2745 = vmatprep.subr.bf16.mxu0 %v2744_v17  ;;  %v2760_v43 = vpack.c.bf16 %v1817_v41, %v1816_v40  ;;  %v1818_v46 = vld [vmem:[%s3692_s2 + $0x2f0] sm:$0xff]  ;;  %v1819_v47 = vld [vmem:[%s3692_s2 + $0x2f8] sm:$0xff]  ;;  %v2604_v48 = vpack.c.bf16 %v1731_v45, %v1730_v44  ;;  %v253_v50 = vld [vmem:[%s3692_s2] sm:$0xff]  ;;  %s2969_s24 = smul.u32 576, %s3697_s19 }
  0x10   : > { %s3078_s7 = scalar_lea.vmem %s3690_s0, %s2968_s21  ;;  %v2764_v49 = vpack.c.bf16 %v1819_v47, %v1818_v46  ;;  %v254_v51 = vld [vmem:[%s3692_s2 + $0x8] sm:$0xff]  ;;  %v1828_v52 = vld [vmem:[%s3692_s2 + $0x300] sm:$0xff]  ;;  %v255_v56 = vld [vmem:[%s3692_s2 + $0x10] sm:$0xff] }
  0x11   : > { %v269_v26 = vld [vmem:[%s3078_s7 + $0x1] sm:$0xff]  ;;  %v3094_v29 = vld [vmem:[%s3078_s7 + $0x12] sm:$0xff]  ;;  %2587 = vmatpush3.bf16.msra.mxu1 %v2584_v16  ;;  %v2608_v54 = vpack.c.bf16 %v254_v51, %v253_v50  ;;  %s3613_s11 = scalar_lea.vmem %s3691_s1, %s2969_s24 }
  0x12   : > { %2168 = vmatprep.mubr.f32.mxu1 %v269_v26  ;;  %2388 = vmatprep.mubr.f32.mxu0 %v3094_v29  ;;  %v1829_v53 = vld [vmem:[%s3692_s2 + $0x308] sm:$0xff]  ;;  %v256_v57 = vld [vmem:[%s3692_s2 + $0x18] sm:$0xff]  ;;  %v1830_v58 = vld [vmem:[%s3692_s2 + $0x310] sm:$0xff] }
  0x13   : > { %2747 = vmatpush3.bf16.msra.mxu0 %v2744_v17  ;;  %2589 = vmatprep.subr.bf16.mxu1 %v2588_v22  ;;  %v2768_v55 = vpack.c.bf16 %v1829_v53, %v1828_v52  ;;  %v1831_v59 = vld [vmem:[%s3692_s2 + $0x318] sm:$0xff]  ;;  %v3161_v61 = vld [vmem:[%s3078_s7 + $0x22] sm:$0xff]  ;;  %v2612_v62 = vpack.c.bf16 %v256_v57, %v255_v56  ;;  %v259_v10 = vld [vmem:[%s3692_s2 + $0x30] sm:$0xff] }
  0x14   : > { %2749 = vmatprep.subr.bf16.mxu0 %v2748_v23  ;;  %v3158_v60 = vld [vmem:[%s3078_s7 + $0x11] sm:$0xff]  ;;  %v2772_v63 = vpack.c.bf16 %v1831_v59, %v1830_v58  ;;  %v257_v0 = vld [vmem:[%s3692_s2 + $0x20] sm:$0xff]  ;;  %v258_v1 = vld [vmem:[%s3692_s2 + $0x28] sm:$0xff] }
  0x15   : > { %2591 = vmatpush3.bf16.msra.mxu1 %v2588_v22  ;;  %v1832_v2 = vld [vmem:[%s3692_s2 + $0x320] sm:$0xff]  ;;  %v1833_v3 = vld [vmem:[%s3692_s2 + $0x328] sm:$0xff]  ;;  %v3181_v5 = vld [vmem:[%s3078_s7 + $0x32] sm:$0xff]  ;;  %v2616_v7 = vpack.c.bf16 %v258_v1, %v257_v0 }
  0x16   : > { %2593 = vmatprep.subr.bf16.mxu1 %v2592_v30  ;;  %v3177_v4 = vld [vmem:[%s3078_s7 + $0x21] sm:$0xff]  ;;  %v3184_v6 = vld [vmem:[%s3078_s7 + $0x31] sm:$0xff]  ;;  %v2776_v9 = vpack.c.bf16 %v1833_v3, %v1832_v2 }
  0x17   : > { %2751 = vmatpush3.bf16.msra.mxu0 %v2748_v23  ;;  %v3187_v8 = vld [vmem:[%s3078_s7 + $0x42] sm:$0xff]  ;;  %v260_v11 = vld [vmem:[%s3692_s2 + $0x38] sm:$0xff]  ;;  %v1834_v12 = vld [vmem:[%s3692_s2 + $0x330] sm:$0xff] }
  0x18   : > { %2753 = vmatprep.subr.bf16.mxu0 %v2752_v31  ;;  %v1835_v13 = vld [vmem:[%s3692_s2 + $0x338] sm:$0xff]  ;;  %v3205_v14 = vld [vmem:[%s3078_s7 + $0x41] sm:$0xff]  ;;  %v2620_v17 = vpack.c.bf16 %v260_v11, %v259_v10  ;;  %v1838_v33 = vld [vmem:[%s3692_s2 + $0x350] sm:$0xff] }
  0x19   : > { %2595 = vmatpush3.bf16.msra.mxu1 %v2592_v30  ;;  %v3209_v15 = vld [vmem:[%s3078_s7 + $0x52] sm:$0xff]  ;;  %v3215_v18 = vld [vmem:[%s3078_s7 + $0x62] sm:$0xff]  ;;  %v2780_v19 = vpack.c.bf16 %v1835_v13, %v1834_v12 }
  0x1a   : > { %2597 = vmatprep.subr.bf16.mxu1 %v2596_v36  ;;  %v3212_v16 = vld [vmem:[%s3078_s7 + $0x51] sm:$0xff]  ;;  %v261_v20 = vld [vmem:[%s3692_s2 + $0x40] sm:$0xff]  ;;  %v262_v21 = vld [vmem:[%s3692_s2 + $0x48] sm:$0xff] }
  0x1b   : > { %2755 = vmatpush3.bf16.msra.mxu0 %v2752_v31  ;;  %v1836_v22 = vld [vmem:[%s3692_s2 + $0x340] sm:$0xff]  ;;  %v1837_v23 = vld [vmem:[%s3692_s2 + $0x348] sm:$0xff]  ;;  %v3237_v25 = vld [vmem:[%s3078_s7 + $0x72] sm:$0xff]  ;;  %v2624_v27 = vpack.c.bf16 %v262_v21, %v261_v20 }
  0x1c   : > { %2757 = vmatprep.subr.bf16.mxu0 %v2756_v37  ;;  %v3233_v24 = vld [vmem:[%s3078_s7 + $0x61] sm:$0xff]  ;;  %v3240_v26 = vld [vmem:[%s3078_s7 + $0x71] sm:$0xff]  ;;  %v2784_v30 = vpack.c.bf16 %v1837_v23, %v1836_v22 }
  0x1d   : > { %2599 = vmatpush3.bf16.msra.mxu1 %v2596_v36  ;;  %v3243_v28 = vld [vmem:[%s3078_s7 + $0x82] sm:$0xff]  ;;  %v263_v31 = vld [vmem:[%s3692_s2 + $0x50] sm:$0xff]  ;;  %v264_v32 = vld [vmem:[%s3692_s2 + $0x58] sm:$0xff] }
  0x1e   : > { %2601 = vmatprep.subr.bf16.mxu1 %v2600_v42  ;;  %v1839_v34 = vld [vmem:[%s3692_s2 + $0x358] sm:$0xff]  ;;  %v245_v35 = vld [vmem:[%s3078_s7] sm:$0xff]  ;;  %v266_v40 = vld [vmem:[%s3692_s2 + $0x68] sm:$0xff] }
  0x1f   : > { %2759 = vmatpush3.bf16.msra.mxu0 %v2756_v37  ;;  %v3263_v36 = vld [vmem:[%s3078_s7 + $0x20] sm:$0xff]  ;;  %v2628_v37 = vpack.c.bf16 %v264_v32, %v263_v31  ;;  %v2788_v38 = vpack.c.bf16 %v1839_v34, %v1838_v33  ;;  %v267_v45 = vld [vmem:[%s3692_s2 + $0x70] sm:$0xff]  ;;  %v268_v46 = vld [vmem:[%s3692_s2 + $0x78] sm:$0xff] }
  0x20   : > { %2761 = vmatprep.subr.bf16.mxu0 %v2760_v43  ;;  %v265_v39 = vld [vmem:[%s3692_s2 + $0x60] sm:$0xff]  ;;  %v1842_v47 = vld [vmem:[%s3692_s2 + $0x370] sm:$0xff]  ;;  %v1733_v52 = vld [vmem:[%s3692_s2 + $0x108] sm:$0xff] }
  0x21   : > { %2603 = vmatpush3.bf16.msra.mxu1 %v2600_v42  ;;  %v1840_v41 = vld [vmem:[%s3692_s2 + $0x360] sm:$0xff]  ;;  %v1841_v42 = vld [vmem:[%s3692_s2 + $0x368] sm:$0xff]  ;;  %v1734_v57 = vld [vmem:[%s3692_s2 + $0x110] sm:$0xff] }
  0x22   : > { %2605 = vmatprep.subr.bf16.mxu1 %v2604_v48  ;;  %v2792_v44 = vpack.c.bf16 %v1841_v42, %v1840_v41  ;;  %v1732_v51 = vld [vmem:[%s3692_s2 + $0x100] sm:$0xff]  ;;  %v1735_v58 = vld [vmem:[%s3692_s2 + $0x118] sm:$0xff]  ;;  %v1854_v59 = vld [vmem:[%s3692_s2 + $0x390] sm:$0xff] }
  0x23   : > { %2763 = vmatpush3.bf16.msra.mxu0 %v2760_v43  ;;  %v2632_v43 = vpack.c.bf16 %v266_v40, %v265_v39  ;;  %v1852_v53 = vld [vmem:[%s3692_s2 + $0x380] sm:$0xff]  ;;  %v3318_v0 = vld [vmem:[%s3078_s7 + $0x30] sm:$0xff]  ;;  %v2644_v1 = vpack.c.bf16 %v1735_v58, %v1734_v57  ;;  %v1857_v10 = vld [vmem:[%s3692_s2 + $0x3a8] sm:$0xff] }
  0x24   : > { %2765 = vmatprep.subr.bf16.mxu0 %v2764_v49  ;;  %v1736_v3 = vld [vmem:[%s3692_s2 + $0x120] sm:$0xff]  ;;  %v3338_v13 = vld [vmem:[%s3078_s7 + $0x50] sm:$0xff]  ;;  %v1739_v20 = vld [vmem:[%s3692_s2 + $0x138] sm:$0xff] }
  0x25   : > { %2607 = vmatpush3.bf16.msra.mxu1 %v2604_v48  ;;  %v1843_v48 = vld [vmem:[%s3692_s2 + $0x378] sm:$0xff]  ;;  %v3335_v11 = vld [vmem:[%s3078_s7 + $0x40] sm:$0xff]  ;;  %v1858_v21 = vld [vmem:[%s3692_s2 + $0x3b0] sm:$0xff] }
  0x26   : > { %2609 = vmatprep.subr.bf16.mxu1 %v2608_v54  ;;  %v2796_v50 = vpack.c.bf16 %v1843_v48, %v1842_v47  ;;  %v1859_v22 = vld [vmem:[%s3692_s2 + $0x3b8] sm:$0xff]  ;;  %v3357_v23 = vld [vmem:[%s3078_s7 + $0x60] sm:$0xff]  ;;  %v1741_v33 = vld [vmem:[%s3692_s2 + $0x148] sm:$0xff] }
  0x27   : > { %2767 = vmatpush3.bf16.msra.mxu0 %v2764_v49  ;;  %v2636_v49 = vpack.c.bf16 %v268_v46, %v267_v45  ;;  %v2812_v31 = vpack.c.bf16 %v1859_v22, %v1858_v21  ;;  %v1740_v32 = vld [vmem:[%s3692_s2 + $0x140] sm:$0xff]  ;;  %v1827_v39 = vld [vmem:[%s3078_s7 + $0x90] sm:$0xff]  ;;  %v1743_v42 = vld [vmem:[%s3692_s2 + $0x158] sm:$0xff] }
  0x28   : > { %2769 = vmatprep.subr.bf16.mxu0 %v2768_v55  ;;  %2169 = vmatmul.mubr.f32.vlgmr.msra.gmra.mrb[0].mxu1 %v3158_v60  ;;  %v1860_v34 = vld [vmem:[%s3692_s2 + $0x3c0] sm:$0xff]  ;;  %v1742_v41 = vld [vmem:[%s3692_s2 + $0x150] sm:$0xff]  ;;  %v1867_v57 = vld [vmem:[%s3692_s2 + $0x3f8] sm:$0xff] }
  0x29   : > { %2611 = vmatpush3.bf16.msra.mxu1 %v2608_v54  ;;  %2171 = vmatprep.mubr.f32.mxu1 %v3177_v4  ;;  %v1853_v54 = vld [vmem:[%s3692_s2 + $0x388] sm:$0xff]  ;;  %v2660_v46 = vpack.c.bf16 %v1743_v42, %v1742_v41  ;;  %v1744_v48 = vld [vmem:[%s3692_s2 + $0x160] sm:$0xff] }
  0x2a   : > { %2389 = vmatmul.mubr.f32.vlgmr.msra.gmra.mrb[0].mxu0 %v3161_v61  ;;  %2613 = vmatprep.subr.bf16.mxu1 %v2612_v62  ;;  %v2800_v56 = vpack.c.bf16 %v1853_v54, %v1852_v53  ;;  %v504_v45 = vld [vmem:[%s3078_s7 + $0x2] sm:$0xff]  ;;  %v1746_v54 = vld [vmem:[%s3692_s2 + $0x170] sm:$0xff] }
  0x2b   : > { %2771 = vmatpush3.bf16.msra.mxu0 %v2768_v55  ;;  %2391 = vmatprep.mubr.f32.mxu0 %v3181_v5  ;;  %v2640_v55 = vpack.c.bf16 %v1733_v52, %v1732_v51  ;;  %v1865_v51 = vld [vmem:[%s3692_s2 + $0x3e8] sm:$0xff]  ;;  %v1760_v22 = vld [vmem:[%s3692_s2 + $0x1a0] sm:$0xff] }
  0x2c   : > { %2773 = vmatprep.subr.bf16.mxu0 %v2772_v63  ;;  %2172 = vmatmul.mubr.f32.gmra.mrb[2].mxu1 %v3184_v6  ;;  %v1764_v42 = vld [vmem:[%s3692_s2 + $0x1c0] sm:$0xff] }
  0x2d   : > { %2615 = vmatpush3.bf16.msra.mxu1 %v2612_v62  ;;  %2174 = vmatprep.mubr.f32.mxu1 %v3205_v14  ;;  %v1855_v62 = vld [vmem:[%s3692_s2 + $0x398] sm:$0xff] }
  0x2e   : > { %2392 = vmatmul.mubr.f32.gmra.mrb[2].mxu0 %v3187_v8  ;;  %2617 = vmatprep.subr.bf16.mxu1 %v2616_v7  ;;  %v2804_v2 = vpack.c.bf16 %v1855_v62, %v1854_v59  ;;  %v1756_v62 = vld [vmem:[%s3692_s2 + $0x180] sm:$0xff] }
  0x2f   : > { %2775 = vmatpush3.bf16.msra.mxu0 %v2772_v63  ;;  %2394 = vmatprep.mubr.f32.mxu0 %v3209_v15  ;;  %v3315_v63 = vld [vmem:[%s3078_s7 + $0x10] sm:$0xff] }
  0x30   : > { %2777 = vmatprep.subr.bf16.mxu0 %v2776_v9  ;;  %2175 = vmatmul.mubr.f32.gmra.mrb[4].mxu1 %v3212_v16 }
  0x31   : > { %2619 = vmatpush3.bf16.msra.mxu1 %v2616_v7  ;;  %2177 = vmatprep.mubr.f32.mxu1 %v3233_v24  ;;  %v1737_v7 = vld [vmem:[%s3692_s2 + $0x128] sm:$0xff] }
  0x32   : > { %2395 = vmatmul.mubr.f32.gmra.mrb[4].mxu0 %v3215_v18  ;;  %2621 = vmatprep.subr.bf16.mxu1 %v2620_v17  ;;  %v2648_v12 = vpack.c.bf16 %v1737_v7, %v1736_v3  ;;  %v1877_v3 = vld [vmem:[%s3692_s2 + $0x408] sm:$0xff] }
  0x33   : > { %2779 = vmatpush3.bf16.msra.mxu0 %v2776_v9  ;;  %2397 = vmatprep.mubr.f32.mxu0 %v3237_v25  ;;  %v1856_v9 = vld [vmem:[%s3692_s2 + $0x3a0] sm:$0xff] }
  0x34   : > { %2781 = vmatprep.subr.bf16.mxu0 %v2780_v19  ;;  %2178 = vmatmul.mubr.f32.gmra.mrb[6].mxu1 %v3240_v26 }
  0x35   : > { %2623 = vmatpush3.bf16.msra.mxu1 %v2620_v17  ;;  %2212 = vmatprep.mubr.f32.mxu1 %v245_v35  ;;  %v2808_v17 = vpack.c.bf16 %v1857_v10, %v1856_v9  ;;  %v1861_v35 = vld [vmem:[%s3692_s2 + $0x3c8] sm:$0xff]  ;;  %v1758_v10 = vld [vmem:[%s3692_s2 + $0x190] sm:$0xff] }
  0x36   : > { %2398 = vmatmul.mubr.f32.gmra.mrb[6].mxu0 %v3243_v28  ;;  %2625 = vmatprep.subr.bf16.mxu1 %v2624_v27  ;;  %v2816_v40 = vpack.c.bf16 %v1861_v35, %v1860_v34  ;;  %v1763_v35 = vld [vmem:[%s3692_s2 + $0x1b8] sm:$0xff] }
  0x37   : > { %2783 = vmatpush3.bf16.msra.mxu0 %v2780_v19  ;;  %2432 = vmatprep.mubr.f32.mxu0 %v3263_v36  ;;  %v1738_v19 = vld [vmem:[%s3692_s2 + $0x130] sm:$0xff] }
  0x38   : > { %2785 = vmatprep.subr.bf16.mxu0 %v2784_v30 }
  0x39   : > { %2627 = vmatpush3.bf16.msra.mxu1 %v2624_v27  ;;  %v2652_v27 = vpack.c.bf16 %v1739_v20, %v1738_v19  ;;  %v1879_v19 = vld [vmem:[%s3692_s2 + $0x418] sm:$0xff] }
  0x3a   : > { %2629 = vmatprep.subr.bf16.mxu1 %v2628_v37 }
  0x3b   : > { %2787 = vmatpush3.bf16.msra.mxu0 %v2784_v30  ;;  %v3360_v30 = vld [vmem:[%s3078_s7 + $0x70] sm:$0xff] }
  0x3c   : > { %2789 = vmatprep.subr.bf16.mxu0 %v2788_v38 }
  0x3d   : > { %2631 = vmatpush3.bf16.msra.mxu1 %v2628_v37  ;;  %v3379_v37 = vld [vmem:[%s3078_s7 + $0x80] sm:$0xff] }
  0x3e   : > { %2633 = vmatprep.subr.bf16.mxu1 %v2632_v43 }
  0x3f   : > { %2791 = vmatpush3.bf16.msra.mxu0 %v2788_v38  ;;  %v2656_v38 = vpack.c.bf16 %v1741_v33, %v1740_v32  ;;  %v1881_v32 = vld [vmem:[%s3692_s2 + $0x428] sm:$0xff] }
  0x40   : > { %2793 = vmatprep.subr.bf16.mxu0 %v2792_v44 }
  0x41   : > { %2635 = vmatpush3.bf16.msra.mxu1 %v2632_v43  ;;  %v1862_v43 = vld [vmem:[%s3692_s2 + $0x3d0] sm:$0xff] }
  0x42   : > { %2637 = vmatprep.subr.bf16.mxu1 %v2636_v49 }
  0x43   : > { %2795 = vmatpush3.bf16.msra.mxu0 %v2792_v44  ;;  %v1863_v44 = vld [vmem:[%s3692_s2 + $0x3d8] sm:$0xff] }
  0x44   : > { %2797 = vmatprep.subr.bf16.mxu0 %v2796_v50  ;;  %v2820_v47 = vpack.c.bf16 %v1863_v44, %v1862_v43  ;;  %v1765_v43 = vld [vmem:[%s3692_s2 + $0x1c8] sm:$0xff]  ;;  %v1884_v44 = vld [vmem:[%s3692_s2 + $0x440] sm:$0xff] }
  0x45   : > { %2639 = vmatpush3.bf16.msra.mxu1 %v2636_v49  ;;  %v1745_v49 = vld [vmem:[%s3692_s2 + $0x168] sm:$0xff] }
  0x46   : > { %2641 = vmatprep.subr.bf16.mxu1 %v2640_v55  ;;  %v2664_v52 = vpack.c.bf16 %v1745_v49, %v1744_v48  ;;  %v1851_v48 = vld [vmem:[%s3078_s7 + $0x91] sm:$0xff] }
  0x47   : > { %2799 = vmatpush3.bf16.msra.mxu0 %v2796_v50  ;;  %v1864_v50 = vld [vmem:[%s3692_s2 + $0x3e0] sm:$0xff] }
  0x48   : > { %2801 = vmatprep.subr.bf16.mxu0 %v2800_v56  ;;  %2213 = vmatmul.mubr.f32.vlgmr.msra.gmra.mrb[0].mxu1 %v3315_v63  ;;  %v2824_v53 = vpack.c.bf16 %v1865_v51, %v1864_v50  ;;  %v1766_v50 = vld [vmem:[%s3692_s2 + $0x1d0] sm:$0xff]  ;;  %v1767_v51 = vld [vmem:[%s3692_s2 + $0x1d8] sm:$0xff] }
  0x49   : > { %2643 = vmatpush3.bf16.msra.mxu1 %v2640_v55  ;;  %2215 = vmatprep.mubr.f32.mxu1 %v3263_v36  ;;  %v1747_v55 = vld [vmem:[%s3692_s2 + $0x178] sm:$0xff] }
  0x4a   : > { %2433 = vmatmul.mubr.f32.vlgmr.msra.gmra.mrb[0].mxu0 %v3318_v0  ;;  %2645 = vmatprep.subr.bf16.mxu1 %v2644_v1  ;;  %v2668_v58 = vpack.c.bf16 %v1747_v55, %v1746_v54  ;;  %v2692_v54 = vpack.c.bf16 %v1767_v51, %v1766_v50  ;;  %v1472_v50 = vld [vmem:[%s3613_s11 + $0x18] sm:$0xff] }
  0x4b   : > { %2803 = vmatpush3.bf16.msra.mxu0 %v2800_v56  ;;  %2435 = vmatprep.mubr.f32.mxu0 %v3335_v11  ;;  %v1866_v56 = vld [vmem:[%s3692_s2 + $0x3f0] sm:$0xff] }
  0x4c   : > { %2805 = vmatprep.subr.bf16.mxu0 %v2804_v2  ;;  %2216 = vmatmul.mubr.f32.gmra.mrb[2].mxu1 %v3318_v0  ;;  %v2828_v59 = vpack.c.bf16 %v1867_v57, %v1866_v56  ;;  %v1768_v56 = vld [vmem:[%s3692_s2 + $0x1e0] sm:$0xff]  ;;  %v1769_v57 = vld [vmem:[%s3692_s2 + $0x1e8] sm:$0xff] }
  0x4d   : > { %2647 = vmatpush3.bf16.msra.mxu1 %v2644_v1  ;;  %2218 = vmatprep.mubr.f32.mxu1 %v3335_v11  ;;  %v1757_v1 = vld [vmem:[%s3692_s2 + $0x188] sm:$0xff] }
  0x4e   : > { %2436 = vmatmul.mubr.f32.gmra.mrb[2].mxu0 %v3338_v13  ;;  %2649 = vmatprep.subr.bf16.mxu1 %v2648_v12  ;;  %v2672_v7 = vpack.c.bf16 %v1757_v1, %v1756_v62  ;;  %v2696_v62 = vpack.c.bf16 %v1769_v57, %v1768_v56  ;;  %v1794_v56 = vld [vmem:[%s3692_s2 + $0x270] sm:$0xff] }
  0x4f   : > { %2807 = vmatpush3.bf16.msra.mxu0 %v2804_v2  ;;  %2438 = vmatprep.mubr.f32.mxu0 %v3357_v23  ;;  %v1876_v2 = vld [vmem:[%s3692_s2 + $0x400] sm:$0xff]  ;;  %v1494_v57 = vld [vmem:[%s3693_s3 + $0x70] sm:$0xff] }
  0x50   : > { %2809 = vmatprep.subr.bf16.mxu0 %v2808_v17  ;;  %2219 = vmatmul.mubr.f32.gmra.mrb[4].mxu1 %v3338_v13  ;;  %v2832_v9 = vpack.c.bf16 %v1877_v3, %v1876_v2  ;;  %v1771_v2 = vld [vmem:[%s3692_s2 + $0x1f8] sm:$0xff]  ;;  %v1890_v3 = vld [vmem:[%s3692_s2 + $0x470] sm:$0xff] }
  0x51   : > { %2651 = vmatpush3.bf16.msra.mxu1 %v2648_v12  ;;  %2221 = vmatprep.mubr.f32.mxu1 %v3357_v23  ;;  %v1759_v12 = vld [vmem:[%s3692_s2 + $0x198] sm:$0xff] }
  0x52   : > { %2439 = vmatmul.mubr.f32.gmra.mrb[4].mxu0 %v3360_v30  ;;  %2653 = vmatprep.subr.bf16.mxu1 %v2652_v27  ;;  %v2676_v20 = vpack.c.bf16 %v1759_v12, %v1758_v10  ;;  %v1780_v10 = vld [vmem:[%s3692_s2 + $0x200] sm:$0xff]  ;;  %v1781_v12 = vld [vmem:[%s3692_s2 + $0x208] sm:$0xff] }
  0x53   : > { %2811 = vmatpush3.bf16.msra.mxu0 %v2808_v17  ;;  %2441 = vmatprep.mubr.f32.mxu0 %v3379_v37  ;;  %v1878_v17 = vld [vmem:[%s3692_s2 + $0x410] sm:$0xff] }
  0x54   : > { %2813 = vmatprep.subr.bf16.mxu0 %v2812_v31  ;;  %2222 = vmatmul.mubr.f32.gmra.mrb[6].mxu1 %v3360_v30  ;;  %v2836_v21 = vpack.c.bf16 %v1879_v19, %v1878_v17  ;;  %v1480_v17 = vld [vmem:[%s3693_s3] sm:$0xff]  ;;  %v1481_v19 = vld [vmem:[%s3693_s3 + $0x8] sm:$0xff] }
  0x55   : > { %2655 = vmatpush3.bf16.msra.mxu1 %v2652_v27  ;;  %2256 = vmatprep.mubr.f32.mxu1 %v504_v45  ;;  %v1761_v27 = vld [vmem:[%s3692_s2 + $0x1a8] sm:$0xff] }
  0x56   : > { %2442 = vmatmul.mubr.f32.gmra.mrb[6].mxu0 %v1827_v39  ;;  %2657 = vmatprep.subr.bf16.mxu1 %v2656_v38  ;;  %v2680_v33 = vpack.c.bf16 %v1761_v27, %v1760_v22  ;;  %v1883_v39 = vld [vmem:[%s3692_s2 + $0x438] sm:$0xff]  ;;  %v1885_v45 = vld [vmem:[%s3692_s2 + $0x448] sm:$0xff]  ;;  %v1782_v22 = vld [vmem:[%s3692_s2 + $0x210] sm:$0xff] }
  0x57   : > { %2815 = vmatpush3.bf16.msra.mxu0 %v2812_v31  ;;  %2476 = vmatprep.mubr.f32.mxu0 %v3177_v4  ;;  %v1880_v31 = vld [vmem:[%s3692_s2 + $0x420] sm:$0xff]  ;;  %v2848_v49 = vpack.c.bf16 %v1885_v45, %v1884_v44  ;;  %v1783_v27 = vld [vmem:[%s3692_s2 + $0x218] sm:$0xff] }
  0x58   : > { %2817 = vmatprep.subr.bf16.mxu0 %v2816_v40  ;;  %v2840_v34 = vpack.c.bf16 %v1881_v32, %v1880_v31  ;;  %v1482_v31 = vld [vmem:[%s3693_s3 + $0x10] sm:$0xff]  ;;  %v1483_v32 = vld [vmem:[%s3693_s3 + $0x18] sm:$0xff]  ;;  %v1788_v45 = vld [vmem:[%s3692_s2 + $0x240] sm:$0xff] }
  0x59   : > { %2659 = vmatpush3.bf16.msra.mxu1 %v2656_v38  ;;  %v1882_v38 = vld [vmem:[%s3692_s2 + $0x430] sm:$0xff] }
  0x5a   : > { %2661 = vmatprep.subr.bf16.mxu1 %v2660_v46  ;;  %v2844_v41 = vpack.c.bf16 %v1883_v39, %v1882_v38  ;;  %v1484_v38 = vld [vmem:[%s3693_s3 + $0x20] sm:$0xff]  ;;  %v1485_v39 = vld [vmem:[%s3693_s3 + $0x28] sm:$0xff] }
  0x5b   : > { %2819 = vmatpush3.bf16.msra.mxu0 %v2816_v40 }
  0x5c   : > { %2821 = vmatprep.subr.bf16.mxu0 %v2820_v47 }
  0x5d   : > { %2663 = vmatpush3.bf16.msra.mxu1 %v2660_v46  ;;  %v3494_v46 = vld [vmem:[%s3078_s7 + $0x81] sm:$0xff] }
  0x5e   : > { %2665 = vmatprep.subr.bf16.mxu1 %v2664_v52 }
  0x5f   : > { %2823 = vmatpush3.bf16.msra.mxu0 %v2820_v47  ;;  %v2688_v47 = vpack.c.bf16 %v1765_v43, %v1764_v42  ;;  %v1787_v42 = vld [vmem:[%s3692_s2 + $0x238] sm:$0xff] }
  0x60   : > { %2825 = vmatprep.subr.bf16.mxu0 %v2824_v53  ;;  %v1487_v43 = vld [vmem:[%s3693_s3 + $0x38] sm:$0xff] }
  0x61   : > { %2667 = vmatpush3.bf16.msra.mxu1 %v2664_v52  ;;  %v1886_v52 = vld [vmem:[%s3692_s2 + $0x450] sm:$0xff] }
  0x62   : > { %2669 = vmatprep.subr.bf16.mxu1 %v2668_v58 }
  0x63   : > { %2827 = vmatpush3.bf16.msra.mxu0 %v2824_v53  ;;  %v1887_v53 = vld [vmem:[%s3692_s2 + $0x458] sm:$0xff] }
  0x64   : > { %2829 = vmatprep.subr.bf16.mxu0 %v2828_v59  ;;  %v2852_v55 = vpack.c.bf16 %v1887_v53, %v1886_v52  ;;  %v1792_v52 = vld [vmem:[%s3692_s2 + $0x260] sm:$0xff]  ;;  %v1793_v53 = vld [vmem:[%s3692_s2 + $0x268] sm:$0xff] }
  0x65   : > { %2671 = vmatpush3.bf16.msra.mxu1 %v2668_v58  ;;  %v1888_v58 = vld [vmem:[%s3692_s2 + $0x460] sm:$0xff] }
  0x66   : > { %2673 = vmatprep.subr.bf16.mxu1 %v2672_v7 }
  0x67   : > { %2831 = vmatpush3.bf16.msra.mxu0 %v2828_v59  ;;  %v1889_v59 = vld [vmem:[%s3692_s2 + $0x468] sm:$0xff] }
  0x68   : > { %2833 = vmatprep.subr.bf16.mxu0 %v2832_v9  ;;  %2257 = vmatmul.mubr.f32.vlgmr.msra.gmra.mrb[0].mxu1 %v3094_v29  ;;  %v1762_v29 = vld [vmem:[%s3692_s2 + $0x1b0] sm:$0xff]  ;;  %v2856_v1 = vpack.c.bf16 %v1889_v59, %v1888_v58  ;;  %v1495_v58 = vld [vmem:[%s3693_s3 + $0x78] sm:$0xff] }
  0x69   : > { %2675 = vmatpush3.bf16.msra.mxu1 %v2672_v7  ;;  %2259 = vmatprep.mubr.f32.mxu1 %v3161_v61  ;;  %v2684_v40 = vpack.c.bf16 %v1763_v35, %v1762_v29  ;;  %v1784_v29 = vld [vmem:[%s3692_s2 + $0x220] sm:$0xff]  ;;  %v1785_v35 = vld [vmem:[%s3692_s2 + $0x228] sm:$0xff] }
  0x6a   : > { %2477 = vmatmul.mubr.f32.vlgmr.msra.gmra.mrb[0].mxu0 %v3184_v6  ;;  %2677 = vmatprep.subr.bf16.mxu1 %v2676_v20 }
  0x6b   : > { %2835 = vmatpush3.bf16.msra.mxu0 %v2832_v9  ;;  %2479 = vmatprep.mubr.f32.mxu0 %v3205_v14 }
  0x6c   : > { %2837 = vmatprep.subr.bf16.mxu0 %v2836_v21  ;;  %2260 = vmatmul.mubr.f32.gmra.mrb[2].mxu1 %v3181_v5 }
  0x6d   : > { %2679 = vmatpush3.bf16.msra.mxu1 %v2676_v20  ;;  %2262 = vmatprep.mubr.f32.mxu1 %v3187_v8  ;;  %v2704_v20 = vpack.c.bf16 %v1781_v12, %v1780_v10 }
  0x6e   : > { %2480 = vmatmul.mubr.f32.gmra.mrb[2].mxu0 %v3212_v16  ;;  %2681 = vmatprep.subr.bf16.mxu1 %v2680_v33 }
  0x6f   : > { %2839 = vmatpush3.bf16.msra.mxu0 %v2836_v21  ;;  %2482 = vmatprep.mubr.f32.mxu0 %v3233_v24  ;;  %v2864_v21 = vpack.c.bf16 %v1481_v19, %v1480_v17 }
  0x70   : > { %2841 = vmatprep.subr.bf16.mxu0 %v2840_v34  ;;  %2263 = vmatmul.mubr.f32.gmra.mrb[4].mxu1 %v3209_v15 }
  0x71   : > { %2683 = vmatpush3.bf16.msra.mxu1 %v2680_v33  ;;  %2265 = vmatprep.mubr.f32.mxu1 %v3215_v18  ;;  %v2708_v33 = vpack.c.bf16 %v1783_v27, %v1782_v22 }
  0x72   : > { %2483 = vmatmul.mubr.f32.gmra.mrb[4].mxu0 %v3240_v26  ;;  %2685 = vmatprep.subr.bf16.mxu1 %v2684_v40 }
  0x73   : > { %2843 = vmatpush3.bf16.msra.mxu0 %v2840_v34  ;;  %2485 = vmatprep.mubr.f32.mxu0 %v3494_v46  ;;  %v2868_v34 = vpack.c.bf16 %v1483_v32, %v1482_v31 }
  0x74   : > { %2845 = vmatprep.subr.bf16.mxu0 %v2844_v41  ;;  %2266 = vmatmul.mubr.f32.gmra.mrb[6].mxu1 %v3237_v25 }
  0x75   : > { %2687 = vmatpush3.bf16.msra.mxu1 %v2684_v40  ;;  %2300 = vmatprep.mubr.f32.mxu1 %v3315_v63  ;;  %v1770_v63 = vld [vmem:[%s3692_s2 + $0x1f0] sm:$0xff]  ;;  %v2712_v40 = vpack.c.bf16 %v1785_v35, %v1784_v29 }
  0x76   : > { %2486 = vmatmul.mubr.f32.gmra.mrb[6].mxu0 %v1851_v48  ;;  %2689 = vmatprep.subr.bf16.mxu1 %v2688_v47  ;;  %v2700_v7 = vpack.c.bf16 %v1771_v2, %v1770_v63  ;;  %v1875_v48 = vld [vmem:[%s3078_s7 + $0x92] sm:$0xff] }
  0x77   : > { %2847 = vmatpush3.bf16.msra.mxu0 %v2844_v41  ;;  %2520 = vmatprep.mubr.f32.mxu0 %v3161_v61  ;;  %v1891_v61 = vld [vmem:[%s3692_s2 + $0x478] sm:$0xff]  ;;  %v2872_v41 = vpack.c.bf16 %v1485_v39, %v1484_v38 }
  0x78   : > { %2849 = vmatprep.subr.bf16.mxu0 %v2848_v49  ;;  %v2860_v9 = vpack.c.bf16 %v1891_v61, %v1890_v3  ;;  %v1474_v63 = vld [vmem:[%s3613_s11 + $0x98] sm:$0xff] }
  0x79   : > { %2691 = vmatpush3.bf16.msra.mxu1 %v2688_v47  ;;  %v1475_v2 = vld [vmem:[%s3613_s11 + $0xd8] sm:$0xff] }
  0x7a   : > { %2693 = vmatprep.subr.bf16.mxu1 %v2692_v54  ;;  %v1476_v3 = vld [vmem:[%s3613_s11 + $0x118] sm:$0xff] }
  0x7b   : > { %2851 = vmatpush3.bf16.msra.mxu0 %v2848_v49  ;;  %v1491_v49 = vld [vmem:[%s3693_s3 + $0x58] sm:$0xff] }
  0x7c   : > { %2853 = vmatprep.subr.bf16.mxu0 %v2852_v55  ;;  %v1477_v61 = vld [vmem:[%s3613_s11 + $0x158] sm:$0xff] }
  0x7d   : > { %2695 = vmatpush3.bf16.msra.mxu1 %v2692_v54  ;;  %v2728_v54 = vpack.c.bf16 %v1793_v53, %v1792_v52 }
  0x7e   : > { %2697 = vmatprep.subr.bf16.mxu1 %v2696_v62 }
  0x7f   : > { %2855 = vmatpush3.bf16.msra.mxu0 %v2852_v55 }
  0x80   : > { %2857 = vmatprep.subr.bf16.mxu0 %v2856_v1 }
  0x81   : > { %2699 = vmatpush3.bf16.msra.mxu1 %v2696_v62  ;;  %v2892_v62 = vpack.c.bf16 %v1495_v58, %v1494_v57 }
  0x82   : > { %2701 = vmatprep.subr.bf16.mxu1 %v2700_v7 }
  0x83   : > { %2859 = vmatpush3.bf16.msra.mxu0 %v2856_v1  ;;  %v1473_v1 = vld [vmem:[%s3613_s11 + $0x58] sm:$0xff] }
  0x84   : > { %2861 = vmatprep.subr.bf16.mxu0 %v2860_v9 }
  0x85   : > { %2703 = vmatpush3.bf16.msra.mxu1 %v2700_v7  ;;  %v1478_v7 = vld [vmem:[%s3613_s11 + $0x198] sm:$0xff] }
  0x86   : > { %2705 = vmatprep.subr.bf16.mxu1 %v2704_v20 }
  0x87   : > { %2863 = vmatpush3.bf16.msra.mxu0 %v2860_v9 }
  0x88   : > { %2865 = vmatprep.subr.bf16.mxu0 %v2864_v21  ;;  %2301 = vmatmul.mubr.f32.vlgmr.msra.gmra.mrb[0].mxu1 %v3263_v36  ;;  %v1786_v36 = vld [vmem:[%s3692_s2 + $0x230] sm:$0xff] }
  0x89   : > { %2707 = vmatpush3.bf16.msra.mxu1 %v2704_v20  ;;  %2303 = vmatprep.mubr.f32.mxu1 %v3318_v0  ;;  %v2716_v44 = vpack.c.bf16 %v1787_v42, %v1786_v36 }
  0x8a   : > { %2521 = vmatmul.mubr.f32.vlgmr.msra.gmra.mrb[0].mxu0 %v3181_v5  ;;  %2709 = vmatprep.subr.bf16.mxu1 %v2708_v33  ;;  %v1486_v5 = vld [vmem:[%s3693_s3 + $0x30] sm:$0xff] }
  0x8b   : > { %2867 = vmatpush3.bf16.msra.mxu0 %v2864_v21  ;;  %2523 = vmatprep.mubr.f32.mxu0 %v3187_v8  ;;  %v2876_v0 = vpack.c.bf16 %v1487_v43, %v1486_v5  ;;  %v1789_v8 = vld [vmem:[%s3692_s2 + $0x248] sm:$0xff] }
  0x8c   : > { %2869 = vmatprep.subr.bf16.mxu0 %v2868_v34  ;;  %2304 = vmatmul.mubr.f32.gmra.mrb[2].mxu1 %v3335_v11  ;;  %v1489_v11 = vld [vmem:[%s3693_s3 + $0x48] sm:$0xff]  ;;  %v2720_v47 = vpack.c.bf16 %v1789_v8, %v1788_v45 }
  0x8d   : > { %2711 = vmatpush3.bf16.msra.mxu1 %v2708_v33  ;;  %2306 = vmatprep.mubr.f32.mxu1 %v3338_v13 }
  0x8e   : > { %2524 = vmatmul.mubr.f32.gmra.mrb[2].mxu0 %v3209_v15  ;;  %2713 = vmatprep.subr.bf16.mxu1 %v2712_v40  ;;  %v1488_v15 = vld [vmem:[%s3693_s3 + $0x40] sm:$0xff] }
  0x8f   : > { %2871 = vmatpush3.bf16.msra.mxu0 %v2868_v34  ;;  %2526 = vmatprep.mubr.f32.mxu0 %v3215_v18  ;;  %v2880_v13 = vpack.c.bf16 %v1489_v11, %v1488_v15  ;;  %v1790_v18 = vld [vmem:[%s3692_s2 + $0x250] sm:$0xff] }
  0x90   : > { %2873 = vmatprep.subr.bf16.mxu0 %v2872_v41  ;;  %2307 = vmatmul.mubr.f32.gmra.mrb[4].mxu1 %v3357_v23  ;;  %v1490_v23 = vld [vmem:[%s3693_s3 + $0x50] sm:$0xff] }
  0x91   : > { %2715 = vmatpush3.bf16.msra.mxu1 %v2712_v40  ;;  %2309 = vmatprep.mubr.f32.mxu1 %v3360_v30  ;;  %v2884_v30 = vpack.c.bf16 %v1491_v49, %v1490_v23 }
  0x92   : > { %2527 = vmatmul.mubr.f32.gmra.mrb[4].mxu0 %v3237_v25  ;;  %2717 = vmatprep.subr.bf16.mxu1 %v2716_v44  ;;  %v1791_v25 = vld [vmem:[%s3692_s2 + $0x258] sm:$0xff] }
  0x93   : > { %2875 = vmatpush3.bf16.msra.mxu0 %v2872_v41  ;;  %2529 = vmatprep.mubr.f32.mxu0 %v3243_v28  ;;  %v2724_v51 = vpack.c.bf16 %v1791_v25, %v1790_v18  ;;  %v1492_v28 = vld [vmem:[%s3693_s3 + $0x60] sm:$0xff] }
  0x94   : > { %2877 = vmatprep.subr.bf16.mxu0 %v2876_v0  ;;  %2310 = vmatmul.mubr.f32.gmra.mrb[6].mxu1 %v3379_v37  ;;  %v1493_v37 = vld [vmem:[%s3693_s3 + $0x68] sm:$0xff] }
  0x95   : > { %2719 = vmatpush3.bf16.msra.mxu1 %v2716_v44  ;;  %2344 = vmatprep.mubr.f32.mxu1 %v3158_v60  ;;  %v2888_v55 = vpack.c.bf16 %v1493_v37, %v1492_v28  ;;  %v1795_v60 = vld [vmem:[%s3692_s2 + $0x278] sm:$0xff] }
  0x96   : > { %2530 = vmatmul.mubr.f32.gmra.mrb[6].mxu0 %v1875_v48  ;;  %2721 = vmatprep.subr.bf16.mxu1 %v2720_v47  ;;  %v2732_v59 = vpack.c.bf16 %v1795_v60, %v1794_v56 }
  0x97   : > { %2879 = vmatpush3.bf16.msra.mxu0 %v2876_v0  ;;  %2564 = vmatprep.mubr.f32.mxu0 %v1472_v50 }
  0x98   : > { %2881 = vmatprep.subr.bf16.mxu0 %v2880_v13 }
  0x99   : > { %2723 = vmatpush3.bf16.msra.mxu1 %v2720_v47 }
  0x9a   : > { %2725 = vmatprep.subr.bf16.mxu1 %v2724_v51 }
  0x9b   : > { %2883 = vmatpush3.bf16.msra.mxu0 %v2880_v13 }
  0x9c   : > { %2885 = vmatprep.subr.bf16.mxu0 %v2884_v30 }
  0x9d   : > { %2727 = vmatpush3.bf16.msra.mxu1 %v2724_v51 }
  0x9e   : > { %2729 = vmatprep.subr.bf16.mxu1 %v2728_v54 }
  0x9f   : > { %2887 = vmatpush3.bf16.msra.mxu0 %v2884_v30 }
  0xa0   : > { %2889 = vmatprep.subr.bf16.mxu0 %v2888_v55 }
  0xa1   : > { %2731 = vmatpush3.bf16.msra.mxu1 %v2728_v54 }
  0xa2   : > { %2733 = vmatprep.subr.bf16.mxu1 %v2732_v59 }
  0xa3   : > { %2891 = vmatpush3.bf16.msra.mxu0 %v2888_v55 }
  0xa4   : > { %2893 = vmatprep.subr.bf16.mxu0 %v2892_v62 }
  0xa5   : > { %2735 = vmatpush3.bf16.msra.mxu1 %v2732_v59 }
  0xa7   : > { %2895 = vmatpush3.bf16.msra.mxu0 %v2892_v62 }
  0xa8   : > { %2345 = vmatmul.mubr.f32.vlgmr.msra.gmra.mrb[0].mxu1 %v3177_v4  ;;  %v1479_v4 = vld [vmem:[%s3613_s11 + $0x1d8] sm:$0xff]  ;;  %s3677_s11 = scalar_lea.vmem %s3695_s5, %s1895_s16 }
  0xa9   : > { %2347 = vmatprep.mubr.f32.mxu1 %v3184_v6 }
  0xaa   : > { %2565 = vmatmul.mubr.f32.vlgmr.msra.gmra.mrb[0].mxu0 %v1473_v1 }
  0xab   : > { %2567 = vmatprep.mubr.f32.mxu0 %v1474_v63 }
  0xac   : > { %2348 = vmatmul.mubr.f32.gmra.mrb[2].mxu1 %v3205_v14  ;;  %v1892_v14 = vld [vmem:[%s3694_s4] ss:$0 sm:$0xff] }
  0xad   : > { %2350 = vmatprep.mubr.f32.mxu1 %v3212_v16 }
  0xae   : > { %2568 = vmatmul.mubr.f32.gmra.mrb[2].mxu0 %v1475_v2 }
  0xaf   : > { %2570 = vmatprep.mubr.f32.mxu0 %v1476_v3 }
  0xb0   : > { %2351 = vmatmul.mubr.f32.gmra.mrb[4].mxu1 %v3233_v24 }
  0xb1   : > { %2353 = vmatprep.mubr.f32.mxu1 %v3240_v26 }
  0xb2   : > { %2571 = vmatmul.mubr.f32.gmra.mrb[4].mxu0 %v1477_v61 }
  0xb3   : > { %2573 = vmatprep.mubr.f32.mxu0 %v1478_v7 }
  0xb4   : > { %2354 = vmatmul.mubr.f32.gmra.mrb[6].mxu1 %v3494_v46 }
  0xb6   : > { %2574 = vmatmul.mubr.f32.gmra.mrb[6].mxu0 %v1479_v4 }
 0x17b   : > { %v2346_v6 = vpop.f32.mrb[0].mxu1 }
 0x17c   : > { %v872_v16 = vpop.f32.mrb[1].mxu1 }
 0x17d   : > { %v2566_v9 = vpop.f32.mrb[0].mxu0 }
 0x17e   : > { %v2896_v10 = vadd.f32 %v2566_v9, %v2346_v6  ;;  %v1562_v12 = vpop.f32.mrb[1].mxu0 }
 0x17f   : > { %v2897_v17 = vadd.f32 %v1562_v12, %v872_v16  ;;  %v2349_v19 = vpop.f32.mrb[2].mxu1 }
 0x180   : > { %v1617_v24 = vadd.f32 %v2896_v10, %v1892_v14  ;;  %v882_v20 = vpop.f32.mrb[3].mxu1 }
 0x181   : > { %v1616_v26 = vadd.f32 %v2897_v17, %v1892_v14  ;;  %v2569_v46 = vpop.f32.mrb[2].mxu0 }
 0x182   : > { %v1625_v21 = vmax.f32 %v1617_v24, 0.0  ;;  %v2898_v22 = vadd.f32 %v2569_v46, %v2349_v19  ;;  %v1572_v27 = vpop.f32.mrb[3].mxu0 }
 0x183   : > { %v1624_v31 = vmax.f32 %v1616_v26, 0.0  ;;  %v2899_v32 = vadd.f32 %v1572_v27, %v882_v20  ;;  %v2352_v34 = vpop.f32.mrb[4].mxu1 }
 0x184   : > { %1633 = vst [vmem:[%s3677_s11 + $0x8] sm:$0xff] %v1625_v21  ;;  %v1619_v33 = vadd.f32 %v2898_v22, %v1892_v14  ;;  %v892_v38 = vpop.f32.mrb[5].mxu1 }
 0x185   : > { %1632 = vst [vmem:[%s3677_s11] sm:$0xff] %v1624_v31  ;;  %v1618_v29 = vadd.f32 %v2899_v32, %v1892_v14  ;;  %v2572_v35 = vpop.f32.mrb[4].mxu0 }
 0x186   : > { %v1627_v39 = vmax.f32 %v1619_v33, 0.0  ;;  %v2900_v40 = vadd.f32 %v2572_v35, %v2352_v34  ;;  %v1582_v41 = vpop.f32.mrb[5].mxu0 }
 0x187   : > { %v1626_v36 = vmax.f32 %v1618_v29, 0.0  ;;  %v2901_v42 = vadd.f32 %v1582_v41, %v892_v38  ;;  %v2355_v43 = vpop.f32.mrb[6].mxu1 }
 0x188   : > { %1635 = vst [vmem:[%s3677_s11 + $0x18] sm:$0xff] %v1627_v39  ;;  %v1621_v5 = vadd.f32 %v2900_v40, %v1892_v14  ;;  %v902_v45 = vpop.f32.mrb[7].mxu1 }
 0x189   : > { %1634 = vst [vmem:[%s3677_s11 + $0x10] sm:$0xff] %v1626_v36  ;;  %v1620_v44 = vadd.f32 %v2901_v42, %v1892_v14  ;;  %v2575_v0 = vpop.f32.mrb[6].mxu0 }
 0x18a   : > { %v1629_v8 = vmax.f32 %v1621_v5, 0.0  ;;  %v2902_v15 = vadd.f32 %v2575_v0, %v2355_v43  ;;  %v1592_v11 = vpop.f32.mrb[7].mxu0 }
 0x18b   : > { %v1628_v47 = vmax.f32 %v1620_v44, 0.0  ;;  %v2903_v48 = vadd.f32 %v1592_v11, %v902_v45 }
 0x18c   : > { %1637 = vst [vmem:[%s3677_s11 + $0x28] sm:$0xff] %v1629_v8  ;;  %v1623_v13 = vadd.f32 %v2902_v15, %v1892_v14 }
 0x18d   : > { %1636 = vst [vmem:[%s3677_s11 + $0x20] sm:$0xff] %v1628_v47  ;;  %v1622_v18 = vadd.f32 %v2903_v48, %v1892_v14 }
 0x18e   : > { %v1631_v25 = vmax.f32 %v1623_v13, 0.0 }
 0x18f   : > { %v1630_v23 = vmax.f32 %v1622_v18, 0.0 }
 0x190   : > { %1639 = vst [vmem:[%s3677_s11 + $0x38] sm:$0xff] %v1631_v25 }
 0x191   : > { %1638 = vst [vmem:[%s3677_s11 + $0x30] sm:$0xff] %v1630_v23 }
 0x192 PF: > { %s15_s18 = sadd.s32 1, %s2984_s18  }
 0x193   : > { %p12_p4 = scmp.ge.s32.totalorder %s15_s18, 4  }
 0x195   :  { %14 = sbr.rel (!%p12_p4) target bundleno = 1 (0x1), region = 83 }

// kernel: residual_block_forward.2
= control target key start
LH: loop header
LB: loop body
LE: loop exit
PB: predicated region body
PF: predicated region fallthrough
CT: control target
= control target key end

     0   :  { %s2841_s12 = smov 0   ;;  %s3471_s0 = inlined_call_operand.vmem [shape: f32[2,9,9,512], index: 0, kind: input, shape index: {}]   ;;  %s3472_s1 = inlined_call_operand.vmem [shape: f32[9,128,128], index: 1, kind: input, shape index: {}]   ;;  %s3473_s2 = inlined_call_operand.vmem [shape: f32[1,128], index: 2, kind: input, shape index: {}]   ;;  %s3474_s3 = inlined_call_operand.vmem [shape: f32[2,8,8,128], index: 3, kind: output, shape index: {}]  }
   0x1 LB: > { %s1652_s13 = sadd.s32 4294967295, %s2819_s12   ;;  %p1656_p0 = scmp.ge.s32.totalorder %s2819_s12, 1  ;;  %s2819_s12 = sphi %s2841_s12, %s13_s12  }
   0x2   : > { %p137_p1 = scmp.lt.s32.totalorder %s2819_s12, 3 }
   0x4   : > { %p138_p2 = pnand %p1656_p0, %p137_p1 }
   0x5   : > { %v1660_v0 = vld [vmem:[%s3472_s1 + $0x80] sm:$0xff] (!%p138_p2)  ;;  %v1661_v1 = vld [vmem:[%s3472_s1 + $0x88] sm:$0xff] (!%p138_p2)  ;;  %p161_p3 = scmp.lt.s32.totalorder (!%p138_p2), %s1652_s13, 1  ;;  %v1662_v5 = vld [vmem:[%s3472_s1 + $0x90] sm:$0xff] (!%p138_p2)  ;;  %vm462_vm0 = vcmask (!%p138_p2), 1046528  }
   0x6   : > { %141 = sbr.rel (%p138_p2) target bundleno = 394 (0x18a), region = 32  ;;  %v1708_v2 = vld [vmem:[%s3472_s1 + $0x200] sm:$0xff] (!%p138_p2)  ;;  %v2436_v3 = vpack.c.bf16 (!%p138_p2), %v1661_v1, %v1660_v0  ;;  %v1709_v4 = vld [vmem:[%s3472_s1 + $0x208] sm:$0xff] (!%p138_p2)  ;;  %v1663_v6 = vld [vmem:[%s3472_s1 + $0x98] sm:$0xff] (!%p138_p2) }
   0x7   : > { %v2564_v7 = vpack.c.bf16 (!%p138_p2), %v1709_v4, %v1708_v2  ;;  %v2440_v8 = vpack.c.bf16 (!%p138_p2), %v1663_v6, %v1662_v5  ;;  %v1710_v9 = vld [vmem:[%s3472_s1 + $0x210] sm:$0xff] (!%p138_p2)  ;;  %v1711_v10 = vld [vmem:[%s3472_s1 + $0x218] sm:$0xff] (!%p138_p2)  ;;  %v1664_v11 = vld [vmem:[%s3472_s1 + $0xa0] sm:$0xff] (!%p138_p2) }
   0x8   : > { %2437 = vmatprep.subr.bf16.mxu1 (!%p138_p2), %v2436_v3  ;;  %v2568_v12 = vpack.c.bf16 (!%p138_p2), %v1711_v10, %v1710_v9  ;;  %v1665_v13 = vld [vmem:[%s3472_s1 + $0xa8] sm:$0xff] (!%p138_p2)  ;;  %v1712_v14 = vld [vmem:[%s3472_s1 + $0x220] sm:$0xff] (!%p138_p2)  ;;  %v1666_v18 = vld [vmem:[%s3472_s1 + $0xb0] sm:$0xff] (!%p138_p2) }
   0x9   : > { %v1713_v15 = vld [vmem:[%s3472_s1 + $0x228] sm:$0xff] (!%p138_p2)  ;;  %2565 = vmatprep.subr.bf16.mxu0 (!%p138_p2), %v2564_v7  ;;  %2439 = vmatpush3.bf16.msra.mxu1 (!%p138_p2), %v2436_v3  ;;  %v2444_v16 = vpack.c.bf16 (!%p138_p2), %v1665_v13, %v1664_v11  ;;  %v1667_v19 = vld [vmem:[%s3472_s1 + $0xb8] sm:$0xff] (!%p138_p2)  ;;  %v1714_v20 = vld [vmem:[%s3472_s1 + $0x230] sm:$0xff] (!%p138_p2) }
   0xa   : > { %2567 = vmatpush3.bf16.msra.mxu0 (!%p138_p2), %v2564_v7  ;;  %2441 = vmatprep.subr.bf16.mxu1 (!%p138_p2), %v2440_v8  ;;  %v2572_v17 = vpack.c.bf16 (!%p138_p2), %v1713_v15, %v1712_v14  ;;  %v1715_v21 = vld [vmem:[%s3472_s1 + $0x238] sm:$0xff] (!%p138_p2)  ;;  %v2448_v22 = vpack.c.bf16 (!%p138_p2), %v1667_v19, %v1666_v18  ;;  %v1668_v24 = vld [vmem:[%s3472_s1 + $0xc0] sm:$0xff] (!%p138_p2)  ;;  %v1669_v25 = vld [vmem:[%s3472_s1 + $0xc8] sm:$0xff] (!%p138_p2) }
   0xb   : > { %2569 = vmatprep.subr.bf16.mxu0 (!%p138_p2), %v2568_v12  ;;  %v2576_v23 = vpack.c.bf16 (!%p138_p2), %v1715_v21, %v1714_v20  ;;  %v1716_v27 = vld [vmem:[%s3472_s1 + $0x240] sm:$0xff] (!%p138_p2)  ;;  %v1717_v28 = vld [vmem:[%s3472_s1 + $0x248] sm:$0xff] (!%p138_p2)  ;;  %v2452_v30 = vpack.c.bf16 (!%p138_p2), %v1669_v25, %v1668_v24  ;;  %v1670_v32 = vld [vmem:[%s3472_s1 + $0xd0] sm:$0xff] (!%p138_p2) }
   0xc   : > { %v2580_v31 = vpack.c.bf16 (!%p138_p2), %v1717_v28, %v1716_v27  ;;  %v1671_v33 = vld [vmem:[%s3472_s1 + $0xd8] sm:$0xff] (!%p138_p2)  ;;  %v1718_v34 = vld [vmem:[%s3472_s1 + $0x250] sm:$0xff] (!%p138_p2)  ;;  %v1672_v38 = vld [vmem:[%s3472_s1 + $0xe0] sm:$0xff] (!%p138_p2) }
   0xd   : > { %s3476_s13 = smov (!%p161_p3, %s1652_s13), 1  ;;  %2443 = vmatpush3.bf16.msra.mxu1 %v2440_v8  ;;  %v1719_v35 = vld [vmem:[%s3472_s1 + $0x258] sm:$0xff]  ;;  %v2456_v36 = vpack.c.bf16 %v1671_v33, %v1670_v32  ;;  %v1673_v39 = vld [vmem:[%s3472_s1 + $0xe8] sm:$0xff]  ;;  %v1720_v40 = vld [vmem:[%s3472_s1 + $0x260] sm:$0xff] }
   0xe   : > { %s2804_s11 = smul.u32 576, %s3476_s13  ;;  %2571 = vmatpush3.bf16.msra.mxu0 %v2568_v12  ;;  %2445 = vmatprep.subr.bf16.mxu1 %v2444_v16  ;;  %v2584_v37 = vpack.c.bf16 %v1719_v35, %v1718_v34  ;;  %v1721_v41 = vld [vmem:[%s3472_s1 + $0x268] sm:$0xff]  ;;  %v2460_v42 = vpack.c.bf16 %v1673_v39, %v1672_v38  ;;  %v1674_v44 = vld [vmem:[%s3472_s1 + $0xf0] sm:$0xff]  ;;  %v1675_v45 = vld [vmem:[%s3472_s1 + $0xf8] sm:$0xff]  ;;  %s1823_s17 = sshll.u32 %s3476_s13, 6 }
   0xf   : > { %2573 = vmatprep.subr.bf16.mxu0 %v2572_v17  ;;  %v2588_v43 = vpack.c.bf16 %v1721_v41, %v1720_v40  ;;  %v1722_v46 = vld [vmem:[%s3472_s1 + $0x270] sm:$0xff]  ;;  %v1723_v47 = vld [vmem:[%s3472_s1 + $0x278] sm:$0xff]  ;;  %v2464_v48 = vpack.c.bf16 %v1675_v45, %v1674_v44  ;;  %v179_v50 = vld [vmem:[%s3472_s1] sm:$0xff]  ;;  %s3458_s20 = scalar_lea.vmem %s3474_s3, %s1823_s17 }
  0x10   : > { %s2903_s24 = scalar_lea.vmem %s3471_s0, %s2804_s11  ;;  %v2592_v49 = vpack.c.bf16 %v1723_v47, %v1722_v46  ;;  %v180_v51 = vld [vmem:[%s3472_s1 + $0x8] sm:$0xff]  ;;  %v1724_v52 = vld [vmem:[%s3472_s1 + $0x280] sm:$0xff]  ;;  %v181_v56 = vld [vmem:[%s3472_s1 + $0x10] sm:$0xff] }
  0x11   : > { %v195_v26 = vld [vmem:[%s2903_s24 + $0x8] sm:$0xff]  ;;  %v763_v29 = vld [vmem:[%s2903_s24 + $0x18] sm:$0xff]  ;;  %2447 = vmatpush3.bf16.msra.mxu1 %v2444_v16  ;;  %v2468_v54 = vpack.c.bf16 %v180_v51, %v179_v50  ;;  %v1726_v58 = vld [vmem:[%s3472_s1 + $0x290] sm:$0xff] }
  0x12   : > { %2072 = vmatprep.mubr.f32.mxu1 %v195_v26  ;;  %2248 = vmatprep.mubr.f32.mxu0 %v763_v29  ;;  %v1725_v53 = vld [vmem:[%s3472_s1 + $0x288] sm:$0xff]  ;;  %v182_v57 = vld [vmem:[%s3472_s1 + $0x18] sm:$0xff]  ;;  %v183_v0 = vld [vmem:[%s3472_s1 + $0x20] sm:$0xff] }
  0x13   : > { %2575 = vmatpush3.bf16.msra.mxu0 %v2572_v17  ;;  %2449 = vmatprep.subr.bf16.mxu1 %v2448_v22  ;;  %v2596_v55 = vpack.c.bf16 %v1725_v53, %v1724_v52  ;;  %v1727_v59 = vld [vmem:[%s3472_s1 + $0x298] sm:$0xff]  ;;  %v2980_v60 = vld [vmem:[%s2903_s24 + $0x48] sm:$0xff]  ;;  %v2472_v62 = vpack.c.bf16 %v182_v57, %v181_v56  ;;  %v1728_v2 = vld [vmem:[%s3472_s1 + $0x2a0] sm:$0xff] }
  0x14   : > { %2577 = vmatprep.subr.bf16.mxu0 %v2576_v23  ;;  %v764_v61 = vld [vmem:[%s2903_s24 + $0x58] sm:$0xff]  ;;  %v2600_v63 = vpack.c.bf16 %v1727_v59, %v1726_v58  ;;  %v184_v1 = vld [vmem:[%s3472_s1 + $0x28] sm:$0xff]  ;;  %v185_v10 = vld [vmem:[%s3472_s1 + $0x30] sm:$0xff] }
  0x15   : > { %2451 = vmatpush3.bf16.msra.mxu1 %v2448_v22  ;;  %v1729_v3 = vld [vmem:[%s3472_s1 + $0x2a8] sm:$0xff]  ;;  %v765_v5 = vld [vmem:[%s2903_s24 + $0x98] sm:$0xff]  ;;  %v2476_v7 = vpack.c.bf16 %v184_v1, %v183_v0  ;;  %v1730_v12 = vld [vmem:[%s3472_s1 + $0x2b0] sm:$0xff] }
  0x16   : > { %2453 = vmatprep.subr.bf16.mxu1 %v2452_v30  ;;  %v2997_v4 = vld [vmem:[%s2903_s24 + $0x88] sm:$0xff]  ;;  %v766_v8 = vld [vmem:[%s2903_s24 + $0xd8] sm:$0xff]  ;;  %v2604_v9 = vpack.c.bf16 %v1729_v3, %v1728_v2  ;;  %v901_v19 = vld [vmem:[%s2903_s24 + $0x10] sm:$0xfe] }
  0x17   : > { %2579 = vmatpush3.bf16.msra.mxu0 %v2576_v23  ;;  %v3001_v6 = vld [vmem:[%s2903_s24 + $0xc8] sm:$0xff]  ;;  %v186_v11 = vld [vmem:[%s3472_s1 + $0x38] sm:$0xff]  ;;  %v902_v20 = vld [vmem:[%s2903_s24 + $0x30] sm:$0x1]  ;;  %v933_v29 = vrot.slane %v901_v19, 1 }
  0x18   : > { %2581 = vmatprep.subr.bf16.mxu0 %v2580_v31  ;;  %v1731_v13 = vld [vmem:[%s3472_s1 + $0x2b8] sm:$0xff]  ;;  %v3019_v14 = vld [vmem:[%s2903_s24 + $0x108] sm:$0xff]  ;;  %v2480_v17 = vpack.c.bf16 %v186_v11, %v185_v10  ;;  %v187_v22 = vld [vmem:[%s3472_s1 + $0x40] sm:$0xff] }
  0x19   : > { %2455 = vmatpush3.bf16.msra.mxu1 %v2452_v30  ;;  %v767_v15 = vld [vmem:[%s2903_s24 + $0x118] sm:$0xff]  ;;  %v3023_v16 = vld [vmem:[%s2903_s24 + $0x148] sm:$0xff]  ;;  %v2608_v21 = vpack.c.bf16 %v1731_v13, %v1730_v12  ;;  %v1732_v24 = vld [vmem:[%s3472_s1 + $0x2c0] sm:$0xff]  ;;  %v934_v30 = vrot.slane %v902_v20, 1 }
  0x1a   : > { %2457 = vmatprep.subr.bf16.mxu1 %v2456_v36  ;;  %v768_v18 = vld [vmem:[%s2903_s24 + $0x158] sm:$0xff]  ;;  %v188_v23 = vld [vmem:[%s3472_s1 + $0x48] sm:$0xff]  ;;  %v189_v34 = vld [vmem:[%s3472_s1 + $0x50] sm:$0xff] }
  0x1b   : > { %2583 = vmatpush3.bf16.msra.mxu0 %v2580_v31  ;;  %v1733_v25 = vld [vmem:[%s3472_s1 + $0x2c8] sm:$0xff]  ;;  %v769_v27 = vld [vmem:[%s2903_s24 + $0x198] sm:$0xff]  ;;  %v2484_v31 = vpack.c.bf16 %v188_v23, %v187_v22  ;;  %v171_v38 = vld [vmem:[%s2903_s24] sm:$0xff]  ;;  %v935_v39 = vsel %vm462_vm0, %v933_v29, %v934_v30 }
  0x1c   : > { %2585 = vmatprep.subr.bf16.mxu0 %v2584_v37  ;;  %v3043_v26 = vld [vmem:[%s2903_s24 + $0x188] sm:$0xff]  ;;  %v770_v32 = vld [vmem:[%s2903_s24 + $0x1d8] sm:$0xff]  ;;  %v2612_v33 = vpack.c.bf16 %v1733_v25, %v1732_v24  ;;  %v1736_v44 = vld [vmem:[%s3472_s1 + $0x2e0] sm:$0xff] }
  0x1d   : > { %2459 = vmatpush3.bf16.msra.mxu1 %v2456_v36  ;;  %v3047_v28 = vld [vmem:[%s2903_s24 + $0x1c8] sm:$0xff]  ;;  %v190_v35 = vld [vmem:[%s3472_s1 + $0x58] sm:$0xff]  ;;  %v1734_v36 = vld [vmem:[%s3472_s1 + $0x2d0] sm:$0xff] }
  0x1e   : > { %2461 = vmatprep.subr.bf16.mxu1 %v2460_v42  ;;  %v2488_v40 = vpack.c.bf16 %v190_v35, %v189_v34  ;;  %v1737_v45 = vld [vmem:[%s3472_s1 + $0x2e8] sm:$0xff]  ;;  %v1738_v50 = vld [vmem:[%s3472_s1 + $0x2f0] sm:$0xff]  ;;  %v1739_v51 = vld [vmem:[%s3472_s1 + $0x2f8] sm:$0xff] }
  0x1f   : > { %2587 = vmatpush3.bf16.msra.mxu0 %v2584_v37  ;;  %v1735_v37 = vld [vmem:[%s3472_s1 + $0x2d8] sm:$0xff]  ;;  %v2620_v47 = vpack.c.bf16 %v1737_v45, %v1736_v44  ;;  %v903_v53 = vld [vmem:[%s2903_s24 + $0x50] sm:$0xfe]  ;;  %v1677_v56 = vld [vmem:[%s3472_s1 + $0x108] sm:$0xff] }
  0x20   : > { %2589 = vmatprep.subr.bf16.mxu0 %v2588_v43  ;;  %v2616_v41 = vpack.c.bf16 %v1735_v37, %v1734_v36  ;;  %v904_v57 = vld [vmem:[%s2903_s24 + $0x70] sm:$0x1]  ;;  %v1748_v58 = vld [vmem:[%s3472_s1 + $0x300] sm:$0xff]  ;;  %v1749_v59 = vld [vmem:[%s3472_s1 + $0x308] sm:$0xff] }
  0x21   : > { %2463 = vmatpush3.bf16.msra.mxu1 %v2460_v42  ;;  %v191_v42 = vld [vmem:[%s3472_s1 + $0x60] sm:$0xff]  ;;  %v1678_v0 = vld [vmem:[%s3472_s1 + $0x110] sm:$0xff]  ;;  %v2628_v3 = vpack.c.bf16 %v1749_v59, %v1748_v58  ;;  %v1751_v10 = vld [vmem:[%s3472_s1 + $0x318] sm:$0xff] }
  0x22   : > { %2465 = vmatprep.subr.bf16.mxu1 %v2464_v48  ;;  %v905_v1 = vld [vmem:[%s2903_s24 + $0x90] sm:$0xfe]  ;;  %v906_v2 = vld [vmem:[%s2903_s24 + $0xb0] sm:$0x1]  ;;  %v3121_v11 = vld [vmem:[%s2903_s24 + $0x40] sm:$0xff] }
  0x23   : > { %2591 = vmatpush3.bf16.msra.mxu0 %v2588_v43  ;;  %v192_v43 = vld [vmem:[%s3472_s1 + $0x68] sm:$0xff]  ;;  %v1680_v12 = vld [vmem:[%s3472_s1 + $0x120] sm:$0xff]  ;;  %v939_v13 = vrot.slane %v905_v1, 1  ;;  %v910_v22 = vld [vmem:[%s2903_s24 + $0x130] sm:$0x1] }
  0x24   : > { %2593 = vmatprep.subr.bf16.mxu0 %v2592_v49  ;;  %v2492_v46 = vpack.c.bf16 %v192_v43, %v191_v42  ;;  %v1681_v24 = vld [vmem:[%s3472_s1 + $0x128] sm:$0xff]  ;;  %v911_v25 = vld [vmem:[%s2903_s24 + $0x150] sm:$0xfe]  ;;  %v1752_v29 = vld [vmem:[%s3472_s1 + $0x320] sm:$0xff]  ;;  %v946_v37 = vrot.slane %v910_v22, 1 }
  0x25   : > { %2467 = vmatpush3.bf16.msra.mxu1 %v2464_v48  ;;  %v193_v48 = vld [vmem:[%s3472_s1 + $0x70] sm:$0xff]  ;;  %v1753_v30 = vld [vmem:[%s3472_s1 + $0x328] sm:$0xff]  ;;  %v3152_v35 = vld [vmem:[%s2903_s24 + $0xc0] sm:$0xff] }
  0x26   : > { %2469 = vmatprep.subr.bf16.mxu1 %v2468_v54  ;;  %v913_v42 = vld [vmem:[%s2903_s24 + $0x190] sm:$0xfe]  ;;  %v914_v43 = vld [vmem:[%s2903_s24 + $0x1b0] sm:$0x1]  ;;  %v2636_v44 = vpack.c.bf16 %v1753_v30, %v1752_v29  ;;  %v1757_v1 = vld [vmem:[%s3472_s1 + $0x348] sm:$0xff] }
  0x27   : > { %2595 = vmatpush3.bf16.msra.mxu0 %v2592_v49  ;;  %v194_v49 = vld [vmem:[%s3472_s1 + $0x78] sm:$0xff]  ;;  %v1754_v45 = vld [vmem:[%s3472_s1 + $0x330] sm:$0xff]  ;;  %v1688_v22 = vld [vmem:[%s3472_s1 + $0x160] sm:$0xff] }
  0x28   : > { %2597 = vmatprep.subr.bf16.mxu0 %v2596_v55  ;;  %2073 = vmatmul.mubr.f32.vlgmr.msra.gmra.mrb[0].mxu1 %v2980_v60  ;;  %v2496_v52 = vpack.c.bf16 %v194_v49, %v193_v48  ;;  %v1755_v48 = vld [vmem:[%s3472_s1 + $0x338] sm:$0xff]  ;;  %v3168_v49 = vld [vmem:[%s2903_s24 + $0x100] sm:$0xff]  ;;  %v1690_v30 = vld [vmem:[%s3472_s1 + $0x170] sm:$0xff] }
  0x29   : > { %2471 = vmatpush3.bf16.msra.mxu1 %v2468_v54  ;;  %2075 = vmatprep.mubr.f32.mxu1 %v2997_v4  ;;  %v2624_v54 = vpack.c.bf16 %v1739_v51, %v1738_v50  ;;  %v3171_v50 = vld [vmem:[%s2903_s24 + $0x140] sm:$0xff] }
  0x2a   : > { %2249 = vmatmul.mubr.f32.vlgmr.msra.gmra.mrb[0].mxu0 %v764_v61  ;;  %2473 = vmatprep.subr.bf16.mxu1 %v2472_v62  ;;  %v936_v61 = vrot.slane %v903_v53, 1  ;;  %v952_v53 = vrot.slane %v914_v43, 1 }
  0x2b   : > { %2599 = vmatpush3.bf16.msra.mxu0 %v2596_v55  ;;  %2251 = vmatprep.mubr.f32.mxu0 %v765_v5  ;;  %v1676_v55 = vld [vmem:[%s3472_s1 + $0x100] sm:$0xff]  ;;  %v1679_v5 = vld [vmem:[%s3472_s1 + $0x118] sm:$0xff] }
  0x2c   : > { %2601 = vmatprep.subr.bf16.mxu0 %v2600_v63  ;;  %2076 = vmatmul.mubr.f32.gmra.mrb[2].mxu1 %v3001_v6 }
  0x2d   : > { %2475 = vmatpush3.bf16.msra.mxu1 %v2472_v62  ;;  %2078 = vmatprep.mubr.f32.mxu1 %v3019_v14  ;;  %v2500_v62 = vpack.c.bf16 %v1677_v56, %v1676_v55  ;;  %v431_v55 = vld [vmem:[%s2903_s24 + $0x20] sm:$0x1] }
  0x2e   : > { %2252 = vmatmul.mubr.f32.gmra.mrb[2].mxu0 %v766_v8  ;;  %2477 = vmatprep.subr.bf16.mxu1 %v2476_v7  ;;  %v908_v8 = vld [vmem:[%s2903_s24 + $0xf0] sm:$0x1] }
  0x2f   : > { %2603 = vmatpush3.bf16.msra.mxu0 %v2600_v63  ;;  %2254 = vmatprep.mubr.f32.mxu0 %v767_v15  ;;  %v937_v63 = vrot.slane %v904_v57, 1  ;;  %v940_v15 = vrot.slane %v906_v2, 1  ;;  %v943_v20 = vrot.slane %v908_v8, 1  ;;  %v3192_v2 = vld [vmem:[%s2903_s24 + $0x180] sm:$0xff] }
  0x30   : > { %2605 = vmatprep.subr.bf16.mxu0 %v2604_v9  ;;  %2079 = vmatmul.mubr.f32.gmra.mrb[4].mxu1 %v3023_v16  ;;  %v3196_v8 = vld [vmem:[%s2903_s24 + $0x1c0] sm:$0xff] }
  0x31   : > { %2479 = vmatpush3.bf16.msra.mxu1 %v2476_v7  ;;  %2081 = vmatprep.mubr.f32.mxu1 %v3043_v26  ;;  %v907_v7 = vld [vmem:[%s2903_s24 + $0xd0] sm:$0xfe]  ;;  %v941_v34 = vsel %vm462_vm0, %v939_v13, %v940_v15  ;;  %v1687_v15 = vld [vmem:[%s3472_s1 + $0x158] sm:$0xff] }
  0x32   : > { %2255 = vmatmul.mubr.f32.gmra.mrb[4].mxu0 %v768_v18  ;;  %2481 = vmatprep.subr.bf16.mxu1 %v2480_v17  ;;  %v2504_v18 = vpack.c.bf16 %v1679_v5, %v1678_v0  ;;  %v942_v19 = vrot.slane %v907_v7, 1  ;;  %v1756_v0 = vld [vmem:[%s3472_s1 + $0x340] sm:$0xff]  ;;  %v464_v5 = vrot.slane %v431_v55, 1  ;;  %v1686_v13 = vld [vmem:[%s3472_s1 + $0x150] sm:$0xff] }
  0x33   : > { %2607 = vmatpush3.bf16.msra.mxu0 %v2604_v9  ;;  %2257 = vmatprep.mubr.f32.mxu0 %v769_v27  ;;  %v1750_v9 = vld [vmem:[%s3472_s1 + $0x310] sm:$0xff] }
  0x34   : > { %2609 = vmatprep.subr.bf16.mxu0 %v2608_v21  ;;  %2082 = vmatmul.mubr.f32.gmra.mrb[6].mxu1 %v3047_v28  ;;  %v2632_v23 = vpack.c.bf16 %v1751_v10, %v1750_v9  ;;  %v912_v27 = vld [vmem:[%s2903_s24 + $0x170] sm:$0x1] }
  0x35   : > { %2483 = vmatpush3.bf16.msra.mxu1 %v2480_v17  ;;  %2116 = vmatprep.mubr.f32.mxu1 %v171_v38  ;;  %v938_v17 = vsel %vm462_vm0, %v936_v61, %v937_v63  ;;  %v2508_v38 = vpack.c.bf16 %v1681_v24, %v1680_v12  ;;  %v2640_v61 = vpack.c.bf16 %v1755_v48, %v1754_v45  ;;  %v1685_v63 = vld [vmem:[%s3472_s1 + $0x148] sm:$0xff]  ;;  %v1760_v24 = vld [vmem:[%s3472_s1 + $0x360] sm:$0xff]  ;;  %v1774_v55 = vld [vmem:[%s3472_s1 + $0x390] sm:$0xff] }
  0x36   : > { %2258 = vmatmul.mubr.f32.gmra.mrb[6].mxu0 %v770_v32  ;;  %2485 = vmatprep.subr.bf16.mxu1 %v2484_v31  ;;  %v1682_v32 = vld [vmem:[%s3472_s1 + $0x130] sm:$0xff]  ;;  %v2644_v12 = vpack.c.bf16 %v1757_v1, %v1756_v0  ;;  %v434_v45 = vld [vmem:[%s2903_s24 + $0x80] sm:$0xfe]  ;;  %v439_v0 = vld [vmem:[%s2903_s24 + $0x120] sm:$0x1] }
  0x37   : > { %2611 = vmatpush3.bf16.msra.mxu0 %v2608_v21  ;;  %2292 = vmatprep.mubr.f32.mxu0 %v935_v39  ;;  %v909_v21 = vld [vmem:[%s2903_s24 + $0x110] sm:$0xfe]  ;;  %v944_v39 = vsel %vm462_vm0, %v942_v19, %v943_v20  ;;  %v2520_v20 = vpack.c.bf16 %v1687_v15, %v1686_v13  ;;  %v436_v48 = vld [vmem:[%s2903_s24 + $0xc0] sm:$0xfe]  ;;  %v1777_v13 = vld [vmem:[%s3472_s1 + $0x3a8] sm:$0xff] }
  0x38   : > { %2613 = vmatprep.subr.bf16.mxu0 %v2612_v33  ;;  %v945_v36 = vrot.slane %v909_v21, 1 }
  0x39   : > { %2487 = vmatpush3.bf16.msra.mxu1 %v2484_v31  ;;  %v3142_v31 = vld [vmem:[%s2903_s24 + $0x80] sm:$0xff] }
  0x3a   : > { %2489 = vmatprep.subr.bf16.mxu1 %v2488_v40  ;;  %v947_v51 = vsel %vm462_vm0, %v945_v36, %v946_v37  ;;  %v432_v36 = vld [vmem:[%s2903_s24 + $0x40] sm:$0xfe]  ;;  %v433_v37 = vld [vmem:[%s2903_s24 + $0x60] sm:$0x1] }
  0x3b   : > { %2615 = vmatpush3.bf16.msra.mxu0 %v2612_v33  ;;  %v1683_v33 = vld [vmem:[%s3472_s1 + $0x138] sm:$0xff]  ;;  %v466_v43 = vrot.slane %v432_v36, 1 }
  0x3c   : > { %2617 = vmatprep.subr.bf16.mxu0 %v2616_v41  ;;  %v2512_v56 = vpack.c.bf16 %v1683_v33, %v1682_v32  ;;  %v1691_v32 = vld [vmem:[%s3472_s1 + $0x178] sm:$0xff]  ;;  %v1762_v33 = vld [vmem:[%s3472_s1 + $0x370] sm:$0xff] }
  0x3d   : > { %2491 = vmatpush3.bf16.msra.mxu1 %v2488_v40  ;;  %v948_v40 = vrot.slane %v911_v25, 1  ;;  %v1761_v25 = vld [vmem:[%s3472_s1 + $0x368] sm:$0xff] }
  0x3e   : > { %2493 = vmatprep.subr.bf16.mxu1 %v2492_v46  ;;  %v2652_v29 = vpack.c.bf16 %v1761_v25, %v1760_v24  ;;  %v444_v25 = vld [vmem:[%s2903_s24 + $0x1c0] sm:$0xfe] }
  0x3f   : > { %2619 = vmatpush3.bf16.msra.mxu0 %v2616_v41  ;;  %v949_v41 = vrot.slane %v912_v27, 1 }
  0x40   : > { %2621 = vmatprep.subr.bf16.mxu0 %v2620_v47 }
  0x41   : > { %2495 = vmatpush3.bf16.msra.mxu1 %v2492_v46  ;;  %v915_v46 = vld [vmem:[%s2903_s24 + $0x1d0] sm:$0xfe]  ;;  %v950_v57 = vsel %vm462_vm0, %v948_v40, %v949_v41  ;;  %v1693_v40 = vld [vmem:[%s3472_s1 + $0x188] sm:$0xff]  ;;  %v1772_v41 = vld [vmem:[%s3472_s1 + $0x380] sm:$0xff] }
  0x42   : > { %2497 = vmatprep.subr.bf16.mxu1 %v2496_v52  ;;  %v954_v58 = vrot.slane %v915_v46, 1  ;;  %v435_v46 = vld [vmem:[%s2903_s24 + $0xa0] sm:$0x1] }
  0x43   : > { %2623 = vmatpush3.bf16.msra.mxu0 %v2620_v47  ;;  %v916_v47 = vld [vmem:[%s2903_s24 + $0x1f0] sm:$0x1] }
  0x44   : > { %2625 = vmatprep.subr.bf16.mxu0 %v2624_v54  ;;  %v955_v59 = vrot.slane %v916_v47, 1 }
  0x45   : > { %2499 = vmatpush3.bf16.msra.mxu1 %v2496_v52  ;;  %v951_v52 = vrot.slane %v913_v42, 1  ;;  %v1773_v42 = vld [vmem:[%s3472_s1 + $0x388] sm:$0xff] }
  0x46   : > { %2501 = vmatprep.subr.bf16.mxu1 %v2500_v62  ;;  %v956_v10 = vsel %vm462_vm0, %v954_v58, %v955_v59  ;;  %v470_v58 = vrot.slane %v435_v46, 1 }
  0x47   : > { %2627 = vmatpush3.bf16.msra.mxu0 %v2624_v54  ;;  %v430_v54 = vld [vmem:[%s2903_s24] sm:$0xfe]  ;;  %v953_v7 = vsel %vm462_vm0, %v951_v52, %v952_v53  ;;  %v2660_v52 = vpack.c.bf16 %v1773_v42, %v1772_v41  ;;  %v1694_v53 = vld [vmem:[%s3472_s1 + $0x190] sm:$0xff]  ;;  %v1701_v42 = vld [vmem:[%s3472_s1 + $0x1c8] sm:$0xff] }
  0x48   : > { %2629 = vmatprep.subr.bf16.mxu0 %v2628_v3  ;;  %2117 = vmatmul.mubr.f32.vlgmr.msra.gmra.mrb[0].mxu1 %v3121_v11 }
  0x49   : > { %2503 = vmatpush3.bf16.msra.mxu1 %v2500_v62  ;;  %2119 = vmatprep.mubr.f32.mxu1 %v3142_v31  ;;  %v1684_v62 = vld [vmem:[%s3472_s1 + $0x140] sm:$0xff] }
  0x4a   : > { %2293 = vmatmul.mubr.f32.vlgmr.msra.gmra.mrb[0].mxu0 %v938_v17  ;;  %2505 = vmatprep.subr.bf16.mxu1 %v2504_v18  ;;  %v2516_v9 = vpack.c.bf16 %v1685_v63, %v1684_v62  ;;  %v1758_v17 = vld [vmem:[%s3472_s1 + $0x350] sm:$0xff]  ;;  %v438_v63 = vld [vmem:[%s2903_s24 + $0x100] sm:$0xfe] }
  0x4b   : > { %2631 = vmatpush3.bf16.msra.mxu0 %v2628_v3  ;;  %2295 = vmatprep.mubr.f32.mxu0 %v941_v34  ;;  %v463_v3 = vrot.slane %v430_v54, 1  ;;  %v2528_v34 = vpack.c.bf16 %v1691_v32, %v1690_v30  ;;  %v1695_v54 = vld [vmem:[%s3472_s1 + $0x198] sm:$0xff]  ;;  %v1698_v30 = vld [vmem:[%s3472_s1 + $0x1b0] sm:$0xff] }
  0x4c   : > { %2633 = vmatprep.subr.bf16.mxu0 %v2632_v23  ;;  %2120 = vmatmul.mubr.f32.gmra.mrb[2].mxu1 %v3152_v35  ;;  %v2536_v1 = vpack.c.bf16 %v1695_v54, %v1694_v53  ;;  %v1778_v32 = vld [vmem:[%s3472_s1 + $0x3b0] sm:$0xff] }
  0x4d   : > { %2507 = vmatpush3.bf16.msra.mxu1 %v2504_v18  ;;  %2122 = vmatprep.mubr.f32.mxu1 %v3168_v49  ;;  %v1759_v18 = vld [vmem:[%s3472_s1 + $0x358] sm:$0xff]  ;;  %v465_v19 = vsel %vm462_vm0, %v463_v3, %v464_v5  ;;  %v440_v3 = vld [vmem:[%s2903_s24 + $0x140] sm:$0xfe]  ;;  %v441_v5 = vld [vmem:[%s2903_s24 + $0x160] sm:$0x1] }
  0x4e   : > { %2296 = vmatmul.mubr.f32.gmra.mrb[2].mxu0 %v944_v39  ;;  %2509 = vmatprep.subr.bf16.mxu1 %v2508_v38  ;;  %v2648_v21 = vpack.c.bf16 %v1759_v18, %v1758_v17  ;;  %v1692_v39 = vld [vmem:[%s3472_s1 + $0x180] sm:$0xff]  ;;  %v475_v17 = vrot.slane %v438_v63, 1  ;;  %v476_v18 = vrot.slane %v439_v0, 1  ;;  %v625_v53 = vld [vmem:[%s2903_s24 + $0x10] sm:$0xff]  ;;  %v1707_v63 = vld [vmem:[%s3472_s1 + $0x1f8] sm:$0xff] }
  0x4f   : > { %2635 = vmatpush3.bf16.msra.mxu0 %v2632_v23  ;;  %2298 = vmatprep.mubr.f32.mxu0 %v947_v51  ;;  %v1689_v23 = vld [vmem:[%s3472_s1 + $0x168] sm:$0xff]  ;;  %v2532_v47 = vpack.c.bf16 %v1693_v40, %v1692_v39  ;;  %v437_v51 = vld [vmem:[%s2903_s24 + $0xe0] sm:$0x1]  ;;  %v1786_v0 = vld [vmem:[%s3472_s1 + $0x3f0] sm:$0xff] }
  0x50   : > { %2637 = vmatprep.subr.bf16.mxu0 %v2636_v44  ;;  %2123 = vmatmul.mubr.f32.gmra.mrb[4].mxu1 %v3171_v50  ;;  %v2524_v27 = vpack.c.bf16 %v1689_v23, %v1688_v22  ;;  %v473_v62 = vrot.slane %v437_v51, 1  ;;  %v442_v22 = vld [vmem:[%s2903_s24 + $0x180] sm:$0xfe]  ;;  %v443_v23 = vld [vmem:[%s2903_s24 + $0x1a0] sm:$0x1]  ;;  %v1702_v51 = vld [vmem:[%s3472_s1 + $0x1d0] sm:$0xff] }
  0x51   : > { %2511 = vmatpush3.bf16.msra.mxu1 %v2508_v38  ;;  %2125 = vmatprep.mubr.f32.mxu1 %v3192_v2  ;;  %v482_v36 = vrot.slane %v443_v23, 1  ;;  %v1811_v23 = vld [vmem:[%s3472_s1 + $0x438] sm:$0xff] }
  0x52   : > { %2299 = vmatmul.mubr.f32.gmra.mrb[4].mxu0 %v950_v57  ;;  %2513 = vmatprep.subr.bf16.mxu1 %v2512_v56  ;;  %v469_v57 = vrot.slane %v434_v45, 1 }
  0x53   : > { %2639 = vmatpush3.bf16.msra.mxu0 %v2636_v44  ;;  %2301 = vmatprep.mubr.f32.mxu0 %v953_v7  ;;  %v467_v44 = vrot.slane %v433_v37, 1 }
  0x54   : > { %2641 = vmatprep.subr.bf16.mxu0 %v2640_v61  ;;  %2126 = vmatmul.mubr.f32.gmra.mrb[6].mxu1 %v3196_v8  ;;  %v471_v15 = vsel %vm462_vm0, %v469_v57, %v470_v58  ;;  %v1705_v57 = vld [vmem:[%s3472_s1 + $0x1e8] sm:$0xff] }
  0x55   : > { %2515 = vmatpush3.bf16.msra.mxu1 %v2512_v56  ;;  %2160 = vmatprep.mubr.f32.mxu1 %v465_v19  ;;  %v1775_v56 = vld [vmem:[%s3472_s1 + $0x398] sm:$0xff]  ;;  %v468_v59 = vsel %vm462_vm0, %v466_v43, %v467_v44  ;;  %v1781_v43 = vld [vmem:[%s3472_s1 + $0x3c8] sm:$0xff] }
  0x56   : > { %2302 = vmatmul.mubr.f32.gmra.mrb[6].mxu0 %v956_v10  ;;  %2517 = vmatprep.subr.bf16.mxu1 %v2516_v9  ;;  %v2664_v7 = vpack.c.bf16 %v1775_v56, %v1774_v55  ;;  %v1697_v10 = vld [vmem:[%s3472_s1 + $0x1a8] sm:$0xff]  ;;  %v1704_v56 = vld [vmem:[%s3472_s1 + $0x1e0] sm:$0xff] }
  0x57   : > { %2643 = vmatpush3.bf16.msra.mxu0 %v2640_v61  ;;  %2336 = vmatprep.mubr.f32.mxu0 %v3121_v11  ;;  %v1763_v11 = vld [vmem:[%s3472_s1 + $0x378] sm:$0xff]  ;;  %v472_v61 = vrot.slane %v436_v48, 1  ;;  %v1785_v58 = vld [vmem:[%s3472_s1 + $0x3e8] sm:$0xff] }
  0x58   : > { %2645 = vmatprep.subr.bf16.mxu0 %v2644_v12  ;;  %v2656_v38 = vpack.c.bf16 %v1763_v11, %v1762_v33  ;;  %v1779_v33 = vld [vmem:[%s3472_s1 + $0x3b8] sm:$0xff]  ;;  %v477_v11 = vsel %vm462_vm0, %v475_v17, %v476_v18  ;;  %v1808_v18 = vld [vmem:[%s3472_s1 + $0x420] sm:$0xff] }
  0x59   : > { %2519 = vmatpush3.bf16.msra.mxu1 %v2516_v9  ;;  %v1696_v9 = vld [vmem:[%s3472_s1 + $0x1a0] sm:$0xff]  ;;  %v474_v19 = vsel %vm462_vm0, %v472_v61, %v473_v62  ;;  %v2672_v41 = vpack.c.bf16 %v1779_v33, %v1778_v32  ;;  %v1706_v62 = vld [vmem:[%s3472_s1 + $0x1f0] sm:$0xff] }
  0x5a   : > { %2521 = vmatprep.subr.bf16.mxu1 %v2520_v20  ;;  %v2540_v24 = vpack.c.bf16 %v1697_v10, %v1696_v9  ;;  %v1806_v10 = vld [vmem:[%s3472_s1 + $0x410] sm:$0xff]  ;;  %v1812_v32 = vld [vmem:[%s3472_s1 + $0x440] sm:$0xff] }
  0x5b   : > { %2647 = vmatpush3.bf16.msra.mxu0 %v2644_v12  ;;  %v1776_v12 = vld [vmem:[%s3472_s1 + $0x3a0] sm:$0xff] }
  0x5c   : > { %2649 = vmatprep.subr.bf16.mxu0 %v2648_v21 }
  0x5d   : > { %2523 = vmatpush3.bf16.msra.mxu1 %v2520_v20  ;;  %v478_v20 = vrot.slane %v440_v3, 1 }
  0x5e   : > { %2525 = vmatprep.subr.bf16.mxu1 %v2524_v27 }
  0x5f   : > { %2651 = vmatpush3.bf16.msra.mxu0 %v2648_v21  ;;  %v479_v21 = vrot.slane %v441_v5, 1  ;;  %v1804_v5 = vld [vmem:[%s3472_s1 + $0x400] sm:$0xff] }
  0x60   : > { %2653 = vmatprep.subr.bf16.mxu0 %v2652_v29 }
  0x61   : > { %2527 = vmatpush3.bf16.msra.mxu1 %v2524_v27  ;;  %v445_v27 = vld [vmem:[%s2903_s24 + $0x1e0] sm:$0x1]  ;;  %v480_v37 = vsel %vm462_vm0, %v478_v20, %v479_v21  ;;  %v628_v20 = vld [vmem:[%s2903_s24 + $0xd0] sm:$0xff] }
  0x62   : > { %2529 = vmatprep.subr.bf16.mxu1 %v2528_v34  ;;  %v485_v39 = vrot.slane %v445_v27, 1  ;;  %v629_v21 = vld [vmem:[%s2903_s24 + $0x110] sm:$0xff]  ;;  %v1796_v27 = vld [vmem:[%s2903_s24 + $0x140] sm:$0xfe] }
  0x63   : > { %2655 = vmatpush3.bf16.msra.mxu0 %v2652_v29  ;;  %v2668_v29 = vpack.c.bf16 %v1777_v13, %v1776_v12  ;;  %v1807_v12 = vld [vmem:[%s3472_s1 + $0x418] sm:$0xff]  ;;  %v626_v13 = vld [vmem:[%s2903_s24 + $0x50] sm:$0xff] }
  0x64   : > { %2657 = vmatprep.subr.bf16.mxu0 %v2656_v38  ;;  %v2696_v17 = vpack.c.bf16 %v1807_v12, %v1806_v10 }
  0x65   : > { %2531 = vmatpush3.bf16.msra.mxu1 %v2528_v34  ;;  %v481_v34 = vrot.slane %v442_v22, 1 }
  0x66   : > { %2533 = vmatprep.subr.bf16.mxu1 %v2532_v47 }
  0x67   : > { %2659 = vmatpush3.bf16.msra.mxu0 %v2656_v38  ;;  %v484_v38 = vrot.slane %v444_v25, 1  ;;  %v483_v44 = vsel %vm462_vm0, %v481_v34, %v482_v36  ;;  %v1789_v25 = vld [vmem:[%s2903_s24 + $0x60] sm:$0x1]  ;;  %v1416_v34 = vrot.slane %v1796_v27, 1 }
  0x68   : > { %2661 = vmatprep.subr.bf16.mxu0 %v2660_v52  ;;  %2161 = vmatmul.mubr.f32.vlgmr.msra.gmra.mrb[0].mxu1 %v468_v59  ;;  %v2556_v59 = vpack.c.bf16 %v1705_v57, %v1704_v56 }
  0x69   : > { %2535 = vmatpush3.bf16.msra.mxu1 %v2532_v47  ;;  %2163 = vmatprep.mubr.f32.mxu1 %v471_v15  ;;  %v486_v45 = vsel %vm462_vm0, %v484_v38, %v485_v39  ;;  %v1747_v47 = vld [vmem:[%s2903_s24 + $0x200] sm:$0xff]  ;;  %v627_v15 = vld [vmem:[%s2903_s24 + $0x90] sm:$0xff] }
  0x6a   : > { %2337 = vmatmul.mubr.f32.vlgmr.msra.gmra.mrb[0].mxu0 %v3142_v31  ;;  %2537 = vmatprep.subr.bf16.mxu1 %v2536_v1  ;;  %v1699_v31 = vld [vmem:[%s3472_s1 + $0x1b8] sm:$0xff]  ;;  %v1814_v39 = vld [vmem:[%s3472_s1 + $0x450] sm:$0xff] }
  0x6b   : > { %2663 = vmatpush3.bf16.msra.mxu0 %v2660_v52  ;;  %2339 = vmatprep.mubr.f32.mxu0 %v3152_v35  ;;  %v2544_v40 = vpack.c.bf16 %v1699_v31, %v1698_v30  ;;  %v1700_v35 = vld [vmem:[%s3472_s1 + $0x1c0] sm:$0xff]  ;;  %v1783_v52 = vld [vmem:[%s3472_s1 + $0x3d8] sm:$0xff]  ;;  %v631_v30 = vld [vmem:[%s2903_s24 + $0x190] sm:$0xff] }
  0x6c   : > { %2665 = vmatprep.subr.bf16.mxu0 %v2664_v7  ;;  %2164 = vmatmul.mubr.f32.gmra.mrb[2].mxu1 %v474_v19  ;;  %v2548_v46 = vpack.c.bf16 %v1701_v42, %v1700_v35  ;;  %v1809_v19 = vld [vmem:[%s3472_s1 + $0x428] sm:$0xff]  ;;  %v1816_v35 = vld [vmem:[%s3472_s1 + $0x460] sm:$0xff] }
  0x6d   : > { %2539 = vmatpush3.bf16.msra.mxu1 %v2536_v1  ;;  %2166 = vmatprep.mubr.f32.mxu1 %v477_v11  ;;  %v2560_v1 = vpack.c.bf16 %v1707_v63, %v1706_v62  ;;  %v2700_v22 = vpack.c.bf16 %v1809_v19, %v1808_v18  ;;  %v1405_v11 = vrot.slane %v1789_v25, 1  ;;  %v1817_v42 = vld [vmem:[%s3472_s1 + $0x468] sm:$0xff] }
  0x6e   : > { %2340 = vmatmul.mubr.f32.gmra.mrb[2].mxu0 %v3168_v49  ;;  %2541 = vmatprep.subr.bf16.mxu1 %v2540_v24  ;;  %v1780_v49 = vld [vmem:[%s3472_s1 + $0x3c0] sm:$0xff] }
  0x6f   : > { %2667 = vmatpush3.bf16.msra.mxu0 %v2664_v7  ;;  %2342 = vmatprep.mubr.f32.mxu0 %v3171_v50  ;;  %v2676_v48 = vpack.c.bf16 %v1781_v43, %v1780_v49  ;;  %v1703_v50 = vld [vmem:[%s3472_s1 + $0x1d8] sm:$0xff]  ;;  %v1805_v7 = vld [vmem:[%s3472_s1 + $0x408] sm:$0xff]  ;;  %v2716_v49 = vpack.c.bf16 %v1817_v42, %v1816_v35  ;;  %v1818_v43 = vld [vmem:[%s3472_s1 + $0x470] sm:$0xff] }
  0x70   : > { %2669 = vmatprep.subr.bf16.mxu0 %v2668_v29  ;;  %2167 = vmatmul.mubr.f32.gmra.mrb[4].mxu1 %v480_v37  ;;  %v2552_v54 = vpack.c.bf16 %v1703_v50, %v1702_v51  ;;  %v2692_v9 = vpack.c.bf16 %v1805_v7, %v1804_v5  ;;  %v1771_v37 = vld [vmem:[%s2903_s24 + $0x208] sm:$0xff]  ;;  %v1799_v51 = vld [vmem:[%s2903_s24 + $0x1a0] sm:$0x1]  ;;  %v1800_v50 = vld [vmem:[%s2903_s24 + $0x1c0] sm:$0xfe] }
  0x71   : > { %2543 = vmatpush3.bf16.msra.mxu1 %v2540_v24  ;;  %2169 = vmatprep.mubr.f32.mxu1 %v483_v44  ;;  %v630_v24 = vld [vmem:[%s2903_s24 + $0x150] sm:$0xff]  ;;  %v1819_v44 = vld [vmem:[%s3472_s1 + $0x478] sm:$0xff]  ;;  %v1420_v57 = vrot.slane %v1799_v51, 1 }
  0x72   : > { %2343 = vmatmul.mubr.f32.gmra.mrb[4].mxu0 %v3192_v2  ;;  %2545 = vmatprep.subr.bf16.mxu1 %v2544_v40  ;;  %v1782_v2 = vld [vmem:[%s3472_s1 + $0x3d0] sm:$0xff] }
  0x73   : > { %2671 = vmatpush3.bf16.msra.mxu0 %v2668_v29  ;;  %2345 = vmatprep.mubr.f32.mxu0 %v3196_v8  ;;  %v2680_v55 = vpack.c.bf16 %v1783_v52, %v1782_v2  ;;  %v1784_v8 = vld [vmem:[%s3472_s1 + $0x3e0] sm:$0xff] }
  0x74   : > { %2673 = vmatprep.subr.bf16.mxu0 %v2672_v41  ;;  %2170 = vmatmul.mubr.f32.gmra.mrb[6].mxu1 %v486_v45  ;;  %v2684_v61 = vpack.c.bf16 %v1785_v58, %v1784_v8  ;;  %v1797_v29 = vld [vmem:[%s2903_s24 + $0x160] sm:$0x1]  ;;  %v1790_v45 = vld [vmem:[%s2903_s24 + $0x80] sm:$0xfe]  ;;  %v1422_v8 = vrot.slane %v1800_v50, 1 }
  0x75   : > { %2547 = vmatpush3.bf16.msra.mxu1 %v2544_v40  ;;  %2204 = vmatprep.mubr.f32.mxu1 %v625_v53  ;;  %v1417_v36 = vrot.slane %v1797_v29, 1  ;;  %v1815_v40 = vld [vmem:[%s3472_s1 + $0x458] sm:$0xff]  ;;  %v1801_v2 = vld [vmem:[%s2903_s24 + $0x1e0] sm:$0x1]  ;;  %v1792_v52 = vld [vmem:[%s2903_s24 + $0xc0] sm:$0xfe] }
  0x76   : > { %2346 = vmatmul.mubr.f32.gmra.mrb[6].mxu0 %v1747_v47  ;;  %2549 = vmatprep.subr.bf16.mxu1 %v2548_v46  ;;  %v1791_v47 = vld [vmem:[%s2903_s24 + $0xa0] sm:$0x1]  ;;  %v1423_v58 = vrot.slane %v1801_v2, 1  ;;  %v1410_v62 = vrot.slane %v1792_v52, 1 }
  0x77   : > { %2675 = vmatpush3.bf16.msra.mxu0 %v2672_v41  ;;  %2380 = vmatprep.mubr.f32.mxu0 %v2980_v60  ;;  %v1787_v60 = vld [vmem:[%s3472_s1 + $0x3f8] sm:$0xff]  ;;  %v1418_v41 = vsel %vm462_vm0, %v1416_v34, %v1417_v36  ;;  %v1793_v53 = vld [vmem:[%s2903_s24 + $0xe0] sm:$0x1] }
  0x78   : > { %2677 = vmatprep.subr.bf16.mxu0 %v2676_v48  ;;  %v2688_v3 = vpack.c.bf16 %v1787_v60, %v1786_v0  ;;  %v1411_v63 = vrot.slane %v1793_v53, 1  ;;  %v1794_v0 = vld [vmem:[%s2903_s24 + $0x100] sm:$0xfe]  ;;  %v1795_v60 = vld [vmem:[%s2903_s24 + $0x120] sm:$0x1] }
  0x79   : > { %2551 = vmatpush3.bf16.msra.mxu1 %v2548_v46  ;;  %v2720_v46 = vpack.c.bf16 %v1819_v44, %v1818_v43  ;;  %v1413_v10 = vrot.slane %v1794_v0, 1  ;;  %v1414_v12 = vrot.slane %v1795_v60, 1 }
  0x7a   : > { %2553 = vmatprep.subr.bf16.mxu1 %v2552_v54 }
  0x7b   : > { %2679 = vmatpush3.bf16.msra.mxu0 %v2676_v48  ;;  %v1798_v48 = vld [vmem:[%s2903_s24 + $0x180] sm:$0xfe] }
  0x7c   : > { %2681 = vmatprep.subr.bf16.mxu0 %v2680_v55  ;;  %v1419_v56 = vrot.slane %v1798_v48, 1 }
  0x7d   : > { %2555 = vmatpush3.bf16.msra.mxu1 %v2552_v54  ;;  %v1407_v54 = vrot.slane %v1790_v45, 1 }
  0x7e   : > { %2557 = vmatprep.subr.bf16.mxu1 %v2556_v59 }
  0x7f   : > { %2683 = vmatpush3.bf16.msra.mxu0 %v2680_v55  ;;  %v1408_v55 = vrot.slane %v1791_v47, 1 }
  0x80   : > { %2685 = vmatprep.subr.bf16.mxu0 %v2684_v61 }
  0x81   : > { %2559 = vmatpush3.bf16.msra.mxu1 %v2556_v59  ;;  %v1802_v59 = vld [vmem:[%s2903_s24 + $0x200] sm:$0xfe]  ;;  %v1409_v7 = vsel %vm462_vm0, %v1407_v54, %v1408_v55 }
  0x82   : > { %2561 = vmatprep.subr.bf16.mxu1 %v2560_v1 }
  0x83   : > { %2687 = vmatpush3.bf16.msra.mxu0 %v2684_v61  ;;  %v1803_v61 = vld [vmem:[%s2903_s24 + $0x220] sm:$0x1] }
  0x84   : > { %2689 = vmatprep.subr.bf16.mxu0 %v2688_v3  ;;  %v1426_v5 = vrot.slane %v1803_v61, 1 }
  0x85   : > { %2563 = vmatpush3.bf16.msra.mxu1 %v2560_v1  ;;  %v1421_v1 = vsel %vm462_vm0, %v1419_v56, %v1420_v57 }
  0x86   : > { %2724 = vmatprep.subr.bf16.mxu1 %v2692_v9 }
  0x87   : > { %2691 = vmatpush3.bf16.msra.mxu0 %v2688_v3  ;;  %v1425_v3 = vrot.slane %v1802_v59, 1 }
  0x88   : > { %2693 = vmatprep.subr.bf16.mxu0 %v2692_v9  ;;  %2205 = vmatmul.mubr.f32.vlgmr.msra.gmra.mrb[0].mxu1 %v626_v13  ;;  %v1412_v13 = vsel %vm462_vm0, %v1410_v62, %v1411_v63 }
  0x89   : > { %2732 = vmatpush3.bf16.msra.mxu1 %v2692_v9  ;;  %2207 = vmatprep.mubr.f32.mxu1 %v627_v15  ;;  %v1427_v15 = vsel %vm462_vm0, %v1425_v3, %v1426_v5 }
  0x8a   : > { %2381 = vmatmul.mubr.f32.vlgmr.msra.gmra.mrb[0].mxu0 %v2997_v4  ;;  %2725 = vmatprep.subr.bf16.mxu1 %v2696_v17  ;;  %v1810_v4 = vld [vmem:[%s3472_s1 + $0x430] sm:$0xff] }
  0x8b   : > { %2695 = vmatpush3.bf16.msra.mxu0 %v2692_v9  ;;  %2383 = vmatprep.mubr.f32.mxu0 %v3001_v6  ;;  %v1788_v6 = vld [vmem:[%s2903_s24 + $0x40] sm:$0xfe]  ;;  %v2704_v31 = vpack.c.bf16 %v1811_v23, %v1810_v4  ;;  %v1424_v9 = vsel %vm462_vm0, %v1422_v8, %v1423_v58 }
  0x8c   : > { %2697 = vmatprep.subr.bf16.mxu0 %v2696_v17  ;;  %2208 = vmatmul.mubr.f32.gmra.mrb[2].mxu1 %v628_v20  ;;  %v1404_v33 = vrot.slane %v1788_v6, 1 }
  0x8d   : > { %2733 = vmatpush3.bf16.msra.mxu1 %v2696_v17  ;;  %2210 = vmatprep.mubr.f32.mxu1 %v629_v21 }
  0x8e   : > { %2384 = vmatmul.mubr.f32.gmra.mrb[2].mxu0 %v3019_v14  ;;  %v1813_v14 = vld [vmem:[%s3472_s1 + $0x448] sm:$0xff]  ;;  %2726 = vmatprep.subr.bf16.mxu1 %v2700_v22 }
  0x8f   : > { %2699 = vmatpush3.bf16.msra.mxu0 %v2696_v17  ;;  %2386 = vmatprep.mubr.f32.mxu0 %v3023_v16  ;;  %v632_v16 = vld [vmem:[%s2903_s24 + $0x1d0] sm:$0xff]  ;;  %v2708_v38 = vpack.c.bf16 %v1813_v14, %v1812_v32  ;;  %v1415_v17 = vsel %vm462_vm0, %v1413_v10, %v1414_v12 }
  0x90   : > { %2701 = vmatprep.subr.bf16.mxu0 %v2700_v22  ;;  %2211 = vmatmul.mubr.f32.gmra.mrb[4].mxu1 %v630_v24 }
  0x91   : > { %2734 = vmatpush3.bf16.msra.mxu1 %v2700_v22  ;;  %2213 = vmatprep.mubr.f32.mxu1 %v631_v30 }
  0x92   : > { %2387 = vmatmul.mubr.f32.gmra.mrb[4].mxu0 %v3043_v26  ;;  %2727 = vmatprep.subr.bf16.mxu1 %v2704_v31  ;;  %v1406_v26 = vsel %vm462_vm0, %v1404_v33, %v1405_v11  ;;  %v1820_v33 = vld [vmem:[%s3473_s2] ss:$0 sm:$0xff] }
  0x93   : > { %2703 = vmatpush3.bf16.msra.mxu0 %v2700_v22  ;;  %2389 = vmatprep.mubr.f32.mxu0 %v3047_v28  ;;  %v2712_v28 = vpack.c.bf16 %v1815_v40, %v1814_v39 }
  0x94   : > { %2705 = vmatprep.subr.bf16.mxu0 %v2704_v31  ;;  %2214 = vmatmul.mubr.f32.gmra.mrb[6].mxu1 %v632_v16 }
  0x95   : > { %2735 = vmatpush3.bf16.msra.mxu1 %v2704_v31  ;;  %2430 = vmatprep.mubr.f32.mxu1 %v1418_v41 }
  0x96   : > { %2390 = vmatmul.mubr.f32.gmra.mrb[6].mxu0 %v1771_v37  ;;  %2728 = vmatprep.subr.bf16.mxu1 %v2708_v38 }
  0x97   : > { %2707 = vmatpush3.bf16.msra.mxu0 %v2704_v31  ;;  %2424 = vmatprep.mubr.f32.mxu0 %v1406_v26 }
  0x98   : > { %2709 = vmatprep.subr.bf16.mxu0 %v2708_v38 }
  0x99   : > { %2736 = vmatpush3.bf16.msra.mxu1 %v2708_v38 }
  0x9a   : > { %2729 = vmatprep.subr.bf16.mxu1 %v2712_v28 }
  0x9b   : > { %2711 = vmatpush3.bf16.msra.mxu0 %v2708_v38 }
  0x9c   : > { %2713 = vmatprep.subr.bf16.mxu0 %v2712_v28 }
  0x9d   : > { %2737 = vmatpush3.bf16.msra.mxu1 %v2712_v28 }
  0x9e   : > { %2730 = vmatprep.subr.bf16.mxu1 %v2716_v49 }
  0x9f   : > { %2715 = vmatpush3.bf16.msra.mxu0 %v2712_v28 }
  0xa0   : > { %2717 = vmatprep.subr.bf16.mxu0 %v2716_v49 }
  0xa1   : > { %2738 = vmatpush3.bf16.msra.mxu1 %v2716_v49 }
  0xa2   : > { %2731 = vmatprep.subr.bf16.mxu1 %v2720_v46 }
  0xa3   : > { %2719 = vmatpush3.bf16.msra.mxu0 %v2716_v49 }
  0xa4   : > { %2721 = vmatprep.subr.bf16.mxu0 %v2720_v46 }
  0xa5   : > { %2739 = vmatpush3.bf16.msra.mxu1 %v2720_v46 }
  0xa7   : > { %2723 = vmatpush3.bf16.msra.mxu0 %v2720_v46 }
  0xa8   : > { %2431 = vmatmul.mubr.f32.vlgmr.msra.gmra.mrb[8].mxu1 %v1421_v1 }
  0xa9   : > { %2433 = vmatprep.mubr.f32.mxu1 %v1424_v9 }
  0xaa   : > { %2425 = vmatmul.mubr.f32.vlgmr.msra.gmra.mrb[0].mxu0 %v1409_v7 }
  0xab   : > { %2427 = vmatprep.mubr.f32.mxu0 %v1412_v13 }
  0xac   : > { %2434 = vmatmul.mubr.f32.gmra.mrb[10].mxu1 %v1427_v15 }
  0xae   : > { %2428 = vmatmul.mubr.f32.gmra.mrb[2].mxu0 %v1415_v17 }
 0x15b   : > { %v2206_v18 = vpop.f32.mrb[0].mxu1 }
 0x15c   : > { %v716_v19 = vpop.f32.mrb[1].mxu1 }
 0x15f   : > { %v2209_v20 = vpop.f32.mrb[2].mxu1 }
 0x160   : > { %v726_v21 = vpop.f32.mrb[3].mxu1 }
 0x163   : > { %v2212_v22 = vpop.f32.mrb[4].mxu1 }
 0x164   : > { %v736_v23 = vpop.f32.mrb[5].mxu1 }
 0x165   : > { %v2388_v4 = vpop.f32.mrb[4].mxu0 }
 0x166   : > { %v2744_v24 = vadd.f32 %v2388_v4, %v2212_v22  ;;  %v1345_v6 = vpop.f32.mrb[5].mxu0 }
 0x167   : > { %v2746_v25 = vadd.f32 %v1345_v6, %v736_v23  ;;  %v2215_v27 = vpop.f32.mrb[6].mxu1 }
 0x168   : > { %v746_v30 = vpop.f32.mrb[7].mxu1 }
 0x169   : > { %v2391_v29 = vpop.f32.mrb[6].mxu0 }
 0x16a   : > { %v2748_v31 = vadd.f32 %v2391_v29, %v2215_v27  ;;  %v1355_v32 = vpop.f32.mrb[7].mxu0 }
 0x16b   : > { %v2750_v14 = vadd.f32 %v1355_v32, %v746_v30 }
 0x17b   : > { %v2432_v11 = vpop.f32.mrb[8].mxu1 }
 0x17c   : > { %v2745_v34 = vadd.f32 %v2744_v24, %v2432_v11  ;;  %v1539_v36 = vpop.f32.mrb[9].mxu1 }
 0x17d   : > { %v2426_v16 = vpop.f32.mrb[0].mxu0  ;;  %v2747_v39 = vadd.f32 %v2746_v25, %v1539_v36 }
 0x17e   : > { %v2740_v37 = vadd.f32 %v2426_v16, %v2206_v18  ;;  %v1519_v38 = vpop.f32.mrb[1].mxu0  ;;  %v1578_v40 = vadd.f32 %v2745_v34, %v1820_v33 }
 0x17f   : > { %v2741_v26 = vadd.f32 %v1519_v38, %v716_v19  ;;  %v1577_v28 = vadd.f32 %v2747_v39, %v1820_v33  ;;  %v2435_v35 = vpop.f32.mrb[10].mxu1 }
 0x180   : > { %v1574_v41 = vadd.f32 %v2740_v37, %v1820_v33  ;;  %v1586_v42 = vmax.f32 %v1578_v40, 0.0  ;;  %v2749_v44 = vadd.f32 %v2748_v31, %v2435_v35  ;;  %v1549_v45 = vpop.f32.mrb[11].mxu1 }
 0x181   : > { %v1573_v49 = vadd.f32 %v2741_v26, %v1820_v33  ;;  %v2429_v43 = vpop.f32.mrb[2].mxu0  ;;  %v1585_v47 = vmax.f32 %v1577_v28, 0.0  ;;  %v2751_v50 = vadd.f32 %v2750_v14, %v1549_v45 }
 0x182   : > { %v1582_v46 = vmax.f32 %v1574_v41, 0.0  ;;  %v2742_v48 = vadd.f32 %v2429_v43, %v2209_v20  ;;  %v1529_v51 = vpop.f32.mrb[3].mxu0  ;;  %1594 = vst [vmem:[%s3458_s20 + $0x28] sm:$0xff] %v1586_v42  ;;  %v1580_v52 = vadd.f32 %v2749_v44, %v1820_v33 }
 0x183   : > { %v1581_v2 = vmax.f32 %v1573_v49, 0.0  ;;  %v2743_v53 = vadd.f32 %v1529_v51, %v726_v21  ;;  %1593 = vst [vmem:[%s3458_s20 + $0x20] sm:$0xff] %v1585_v47  ;;  %v1579_v55 = vadd.f32 %v2751_v50, %v1820_v33 }
 0x184   : > { %1590 = vst [vmem:[%s3458_s20 + $0x8] sm:$0xff] %v1582_v46  ;;  %v1576_v54 = vadd.f32 %v2742_v48, %v1820_v33  ;;  %v1588_v56 = vmax.f32 %v1580_v52, 0.0 }
 0x185   : > { %1589 = vst [vmem:[%s3458_s20] sm:$0xff] %v1581_v2  ;;  %v1575_v57 = vadd.f32 %v2743_v53, %v1820_v33  ;;  %v1587_v58 = vmax.f32 %v1579_v55, 0.0 }
 0x186   : > { %v1584_v8 = vmax.f32 %v1576_v54, 0.0  ;;  %1596 = vst [vmem:[%s3458_s20 + $0x38] sm:$0xff] %v1588_v56 }
 0x187   : > { %v1583_v59 = vmax.f32 %v1575_v57, 0.0  ;;  %1595 = vst [vmem:[%s3458_s20 + $0x30] sm:$0xff] %v1587_v58 }
 0x188   : > { %1592 = vst [vmem:[%s3458_s20 + $0x18] sm:$0xff] %v1584_v8 }
 0x189   : > { %1591 = vst [vmem:[%s3458_s20 + $0x10] sm:$0xff] %v1583_v59 }
 0x18a PF: > { %s13_s12 = sadd.s32 1, %s2819_s12  }
 0x18b   : > { %p10_p4 = scmp.ge.s32.totalorder %s13_s12, 4  }
 0x18d   :  { %12 = sbr.rel (!%p10_p4) target bundleno = 1 (0x1), region = 71 }

</bundles_post_ra>
